<compile_context>
chip_gen: v7x
topology: tpu7x:2x2x1
jax: 0.10.0
libtpu: 0.0.40
codegen_flags: <defaults>
</compile_context>

<pallas_src>
import math

import jax
import jax.numpy as jnp
from jax.experimental import pallas as pl
from jax.experimental.pallas import tpu as pltpu

# ---- small, module-consistent shapes -----------------------------------
S = 8            # sequence length
B = 2            # batch
E = 32           # d_model
H = 4            # nhead
DH = E // H      # head dim
FF = 64          # dim_feedforward
NUM_LAYERS = 2
EPS = 1e-5       # PyTorch LayerNorm default eps
N = B * S        # flattened rows
E3 = 3 * E       # packed QKV width


def _layer_norm(x, gamma, beta):
    # Fused statistics: one pass for mean and mean-of-squares (var = E[x^2]-mu^2).
    mu = jnp.mean(x, axis=-1, keepdims=True)
    ms = jnp.mean(x * x, axis=-1, keepdims=True)
    var = ms - mu * mu
    return (x - mu) * jax.lax.rsqrt(var + EPS) * gamma + beta


# ---- single fused kernel: both layers + final norm ------------------------
def fused_encoder_kernel(x_ref, perm_ref, wqkv_ref, wo_ref, w1_ref, w2_ref,
                         vecs_ref, o_ref):
    # seq-major -> batch-major row reorder on the MXU (exact 0/1 matmul):
    # replaces the former wrapper-side jnp.transpose.
    x = jnp.dot(perm_ref[0], x_ref[...],
                preferred_element_type=jnp.float32)            # (N, E) batch-major
    scale = 1.0 / math.sqrt(DH)

    for l in range(NUM_LAYERS):          # static unroll; weights stay in VMEM
        wqkv = wqkv_ref[l]               # (E, 3E)
        wo = wo_ref[l]                   # (E, E)
        w1 = w1_ref[l]                   # (E, FF)
        w2 = w2_ref[l]                   # (FF, E)
        # bias / LN rows, pre-broadcast to (N, width) at pack time:
        # no broadcast_in_dim inside the kernel.
        bqkv = vecs_ref[l, 0, :, :]      # (N, 3E)
        bo = vecs_ref[l, 1, :, :E]       # (N, E)
        b1 = vecs_ref[l, 2, :, :FF]      # (N, FF)
        b2 = vecs_ref[l, 3, :, :E]
        g1 = vecs_ref[l, 4, :, :E]
        be1 = vecs_ref[l, 5, :, :E]
        g2 = vecs_ref[l, 6, :, :E]
        be2 = vecs_ref[l, 7, :, :E]

        # ---- fused QKV projection: one (N,E)x(E,3E) matmul ----
        qkv = jnp.dot(x, wqkv, preferred_element_type=jnp.float32) + bqkv
        q3 = qkv[:, 0:E].reshape(B, S, E)
        k3 = qkv[:, E:2 * E].reshape(B, S, E)
        v3 = qkv[:, 2 * E:3 * E].reshape(B, S, E)

        # ---- multi-head attention ----
        # TODO(synk): the fully batched 'bqhd,bkhd->bhqk' einsum needs a
        # two-batch-dim dot_general that Mosaic does not lower; heads stay in a
        # short static loop, but the output projection below is a single
        # (N,E)x(E,E) matmul (no per-head Wo, no accumulate chain).
        heads = []
        for h in range(H):
            sl = slice(h * DH, (h + 1) * DH)
            qh, kh, vh = q3[..., sl], k3[..., sl], v3[..., sl]   # (B, S, DH)
            s = jnp.einsum('bqd,bkd->bqk', qh, kh,
                           preferred_element_type=jnp.float32) * scale
            s = s - jnp.max(s, axis=-1, keepdims=True)
            p = jnp.exp(s)
            p = p * pl.reciprocal(jnp.sum(p, axis=-1, keepdims=True),
                                  approx=False)
            oh = jnp.einsum('bqk,bkd->bqd', p, vh,
                            preferred_element_type=jnp.float32)  # (B, S, DH)
            heads.append(oh.reshape(N, DH))
        ctx = jnp.concatenate(heads, axis=-1)                    # (N, E)
        attn = jnp.dot(ctx, wo, preferred_element_type=jnp.float32) + bo

        x1 = _layer_norm(x + attn, g1, be1)                      # add & norm1

        hdn = jnp.dot(x1, w1, preferred_element_type=jnp.float32) + b1
        hdn = jnp.maximum(hdn, 0.0)                              # ReLU
        ff = jnp.dot(hdn, w2, preferred_element_type=jnp.float32) + b2

        x = _layer_norm(x1 + ff, g2, be2)                        # add & norm2

    # final LayerNorm (gamma/beta live in rows 8/9 of the layer-0 vec slab)
    out = _layer_norm(x, vecs_ref[0, 8, :, :E], vecs_ref[0, 9, :, :E])
    # batch-major -> seq-major row reorder (inverse permutation matmul)
    o_ref[...] = jnp.dot(perm_ref[1], out, preferred_element_type=jnp.float32)


# ---- deterministic parameter init (shapes per nn.TransformerEncoderLayer) ----
def init_layer_params(key):
    ks = jax.random.split(key, 8)

    def lin(k, fan_in, shape):
        bound = 1.0 / math.sqrt(fan_in)
        return jax.random.uniform(k, shape, jnp.float32, -bound, bound)

    return dict(
        wq=lin(ks[0], E, (E, E)), wk=lin(ks[1], E, (E, E)), wv=lin(ks[2], E, (E, E)),
        bq=lin(ks[3], E, (1, E)), bk=lin(ks[3], E, (1, E)) * 0.5,
        bv=lin(ks[3], E, (1, E)) * 0.25,
        wo=lin(ks[4], E, (E, E)), bo=lin(ks[5], E, (1, E)),
        w1=lin(ks[6], E, (E, FF)), b1=lin(ks[6], E, (1, FF)) * 0.5,
        w2=lin(ks[7], FF, (FF, E)), b2=lin(ks[7], FF, (1, E)) * 0.5,
        g1=jnp.ones((1, E), jnp.float32), be1=jnp.zeros((1, E), jnp.float32),
        g2=jnp.ones((1, E), jnp.float32), be2=jnp.zeros((1, E), jnp.float32),
    )


def pack_params(layer_params, final_gamma, final_beta):
    """Pack all parameters into a handful of stacked, VMEM-friendly slabs."""
    def row(v):
        v = jnp.pad(v, ((0, 0), (0, E3 - v.shape[1])))   # (1, 3E)
        return jnp.broadcast_to(v, (N, E3))               # pre-broadcast (N, 3E)

    wqkv_all, wo_all, w1_all, w2_all, vecs_all = [], [], [], [], []
    for p in layer_params:
        wqkv_all.append(jnp.concatenate([p['wq'], p['wk'], p['wv']], axis=1))
        wo_all.append(p['wo'])
        w1_all.append(p['w1'])
        w2_all.append(p['w2'])
        vecs_all.append(jnp.stack([
            row(jnp.concatenate([p['bq'], p['bk'], p['bv']], axis=1)),  # bqkv
            row(p['bo']), row(p['b1']), row(p['b2']),
            row(p['g1']), row(p['be1']), row(p['g2']), row(p['be2']),
            row(final_gamma), row(final_beta)], axis=0))   # (10, N, 3E)

    # 0/1 permutation matrices (seq-major <-> batch-major row reorder):
    # row i of (perm @ x) equals x[src_idx[i]].
    src_idx = jnp.arange(N).reshape(S, B).T.reshape(N)     # b-major <- s-major
    perm = jax.nn.one_hot(src_idx, N, dtype=jnp.float32)   # (N, N)
    perm2 = jnp.stack([perm, perm.T], axis=0)              # forward + inverse

    return (perm2,                 # (2, N, N)
            jnp.stack(wqkv_all),   # (L, E, 3E)
            jnp.stack(wo_all),     # (L, E, E)
            jnp.stack(w1_all),     # (L, E, FF)
            jnp.stack(w2_all),     # (L, FF, E)
            jnp.stack(vecs_all))   # (L, 10, N, 3E)


# ---- wrapper mirroring TransformerEncoder.forward ------------------------
@jax.jit
def _encoder_core(src, packed):
    x2d = src.reshape(N, E)                      # seq-first flatten, NO transpose
    out2d = pl.pallas_call(
        fused_encoder_kernel,
        out_shape=jax.ShapeDtypeStruct((N, E), jnp.float32),
        in_specs=[pl.BlockSpec(memory_space=pltpu.MemorySpace.VMEM)
                  for _ in range(7)],
        out_specs=pl.BlockSpec(memory_space=pltpu.MemorySpace.VMEM),
    )(x2d, *packed)
    return out2d.reshape(S, B, E)                # seq-first again, NO transpose


def transformer_encoder(src, packed_params):
    """src: (S, B, E) seq-first. Returns (output, output_noise, left_tokens, idxs)."""
    output = _encoder_core(src, packed_params)
    # TODO(synk): gtpooling noise/pruning branch unavailable; output_noise is
    # the same normalized tensor, left_token = S, idx = arange(S).
    output_noise = output
    left_tokens = [S] * NUM_LAYERS
    idxs = [jnp.broadcast_to(jnp.arange(S), (B, S)) for _ in range(NUM_LAYERS)]
    return output, output_noise, left_tokens, idxs


if __name__ == "__main__":
    key = jax.random.PRNGKey(0)
    k_src, k_layers = jax.random.split(key)
    src = jax.random.normal(k_src, (S, B, E), jnp.float32)

    layer_keys = jax.random.split(k_layers, NUM_LAYERS)
    layer_params = [init_layer_params(k) for k in layer_keys]
    packed = pack_params(layer_params,
                         jnp.ones((1, E), jnp.float32),
                         jnp.zeros((1, E), jnp.float32))

    out, out_noise, left_tokens, idxs = transformer_encoder(src, packed)
    jax.block_until_ready(out)
    jax.block_until_ready(out_noise)

    assert out.shape == (S, B, E) and out_noise.shape == (S, B, E)
    assert len(left_tokens) == NUM_LAYERS and len(idxs) == NUM_LAYERS
    print("KERNEL_OK")
</pallas_src>

<mosaic_0001>
module attributes {stable_mosaic.version = 11 : i64} {
  func.func @fused_encoder_kernel(%arg0: memref<16x32xf32, #tpu.memory_space<vmem>>, %arg1: memref<2x16x16xf32, #tpu.memory_space<vmem>>, %arg2: memref<2x32x96xf32, #tpu.memory_space<vmem>>, %arg3: memref<2x32x32xf32, #tpu.memory_space<vmem>>, %arg4: memref<2x32x64xf32, #tpu.memory_space<vmem>>, %arg5: memref<2x64x32xf32, #tpu.memory_space<vmem>>, %arg6: memref<2x10x16x96xf32, #tpu.memory_space<vmem>>, %arg7: memref<16x32xf32, #tpu.memory_space<vmem>>) attributes {dimension_semantics = [], scalar_prefetch = 0 : i64, scratch_operands = 0 : i64, tpu.core_type = #tpu.core_type<tc>} {
    %c0 = arith.constant 0 : index
    %c0_0 = arith.constant 0 : index
    %c0_1 = arith.constant 0 : index
    %0 = vector.load %arg1[%c0, %c0_0, %c0_1] : memref<2x16x16xf32, #tpu.memory_space<vmem>>, vector<1x16x16xf32>
    %1 = vector.shape_cast %0 : vector<1x16x16xf32> to vector<16x16xf32>
    %c0_2 = arith.constant 0 : index
    %c0_3 = arith.constant 0 : index
    %2 = vector.load %arg0[%c0_2, %c0_3] : memref<16x32xf32, #tpu.memory_space<vmem>>, vector<16x32xf32>
    %cst = arith.constant dense<0.000000e+00> : vector<16x32xf32>
    %3 = tpu.matmul %1, %2, %cst {dimension_numbers = #tpu.dot_dimension_numbers<[1], [0], [0], [1], [0, 0, 1, 1], [], []>} : vector<16x16xf32>, vector<16x32xf32>, vector<16x32xf32> -> vector<16x32xf32>
    %c0_4 = arith.constant 0 : index
    %c0_5 = arith.constant 0 : index
    %c0_6 = arith.constant 0 : index
    %4 = vector.load %arg2[%c0_4, %c0_5, %c0_6] : memref<2x32x96xf32, #tpu.memory_space<vmem>>, vector<1x32x96xf32>
    %5 = vector.shape_cast %4 : vector<1x32x96xf32> to vector<32x96xf32>
    %c0_7 = arith.constant 0 : index
    %c0_8 = arith.constant 0 : index
    %c0_9 = arith.constant 0 : index
    %6 = vector.load %arg3[%c0_7, %c0_8, %c0_9] : memref<2x32x32xf32, #tpu.memory_space<vmem>>, vector<1x32x32xf32>
    %7 = vector.shape_cast %6 : vector<1x32x32xf32> to vector<32x32xf32>
    %c0_10 = arith.constant 0 : index
    %c0_11 = arith.constant 0 : index
    %c0_12 = arith.constant 0 : index
    %8 = vector.load %arg4[%c0_10, %c0_11, %c0_12] : memref<2x32x64xf32, #tpu.memory_space<vmem>>, vector<1x32x64xf32>
    %9 = vector.shape_cast %8 : vector<1x32x64xf32> to vector<32x64xf32>
    %c0_13 = arith.constant 0 : index
    %c0_14 = arith.constant 0 : index
    %c0_15 = arith.constant 0 : index
    %10 = vector.load %arg5[%c0_13, %c0_14, %c0_15] : memref<2x64x32xf32, #tpu.memory_space<vmem>>, vector<1x64x32xf32>
    %11 = vector.shape_cast %10 : vector<1x64x32xf32> to vector<64x32xf32>
    %c0_16 = arith.constant 0 : index
    %c0_17 = arith.constant 0 : index
    %c0_18 = arith.constant 0 : index
    %c0_19 = arith.constant 0 : index
    %12 = vector.load %arg6[%c0_16, %c0_17, %c0_18, %c0_19] : memref<2x10x16x96xf32, #tpu.memory_space<vmem>>, vector<1x1x16x96xf32>
    %13 = vector.shape_cast %12 : vector<1x1x16x96xf32> to vector<16x96xf32>
    %c0_20 = arith.constant 0 : index
    %c1 = arith.constant 1 : index
    %c0_21 = arith.constant 0 : index
    %c0_22 = arith.constant 0 : index
    %14 = vector.load %arg6[%c0_20, %c1, %c0_21, %c0_22] : memref<2x10x16x96xf32, #tpu.memory_space<vmem>>, vector<1x1x16x32xf32>
    %15 = vector.shape_cast %14 : vector<1x1x16x32xf32> to vector<16x32xf32>
    %c0_23 = arith.constant 0 : index
    %c2 = arith.constant 2 : index
    %c0_24 = arith.constant 0 : index
    %c0_25 = arith.constant 0 : index
    %16 = vector.load %arg6[%c0_23, %c2, %c0_24, %c0_25] : memref<2x10x16x96xf32, #tpu.memory_space<vmem>>, vector<1x1x16x64xf32>
    %17 = vector.shape_cast %16 : vector<1x1x16x64xf32> to vector<16x64xf32>
    %c0_26 = arith.constant 0 : index
    %c3 = arith.constant 3 : index
    %c0_27 = arith.constant 0 : index
    %c0_28 = arith.constant 0 : index
    %18 = vector.load %arg6[%c0_26, %c3, %c0_27, %c0_28] : memref<2x10x16x96xf32, #tpu.memory_space<vmem>>, vector<1x1x16x32xf32>
    %19 = vector.shape_cast %18 : vector<1x1x16x32xf32> to vector<16x32xf32>
    %c0_29 = arith.constant 0 : index
    %c4 = arith.constant 4 : index
    %c0_30 = arith.constant 0 : index
    %c0_31 = arith.constant 0 : index
    %20 = vector.load %arg6[%c0_29, %c4, %c0_30, %c0_31] : memref<2x10x16x96xf32, #tpu.memory_space<vmem>>, vector<1x1x16x32xf32>
    %21 = vector.shape_cast %20 : vector<1x1x16x32xf32> to vector<16x32xf32>
    %c0_32 = arith.constant 0 : index
    %c5 = arith.constant 5 : index
    %c0_33 = arith.constant 0 : index
    %c0_34 = arith.constant 0 : index
    %22 = vector.load %arg6[%c0_32, %c5, %c0_33, %c0_34] : memref<2x10x16x96xf32, #tpu.memory_space<vmem>>, vector<1x1x16x32xf32>
    %23 = vector.shape_cast %22 : vector<1x1x16x32xf32> to vector<16x32xf32>
    %c0_35 = arith.constant 0 : index
    %c6 = arith.constant 6 : index
    %c0_36 = arith.constant 0 : index
    %c0_37 = arith.constant 0 : index
    %24 = vector.load %arg6[%c0_35, %c6, %c0_36, %c0_37] : memref<2x10x16x96xf32, #tpu.memory_space<vmem>>, vector<1x1x16x32xf32>
    %25 = vector.shape_cast %24 : vector<1x1x16x32xf32> to vector<16x32xf32>
    %c0_38 = arith.constant 0 : index
    %c7 = arith.constant 7 : index
    %c0_39 = arith.constant 0 : index
    %c0_40 = arith.constant 0 : index
    %26 = vector.load %arg6[%c0_38, %c7, %c0_39, %c0_40] : memref<2x10x16x96xf32, #tpu.memory_space<vmem>>, vector<1x1x16x32xf32>
    %27 = vector.shape_cast %26 : vector<1x1x16x32xf32> to vector<16x32xf32>
    %cst_41 = arith.constant dense<0.000000e+00> : vector<16x96xf32>
    %28 = tpu.matmul %3, %5, %cst_41 {dimension_numbers = #tpu.dot_dimension_numbers<[1], [0], [0], [1], [0, 0, 1, 1], [], []>} : vector<16x32xf32>, vector<32x96xf32>, vector<16x96xf32> -> vector<16x96xf32>
    %29 = arith.addf %28, %13 : vector<16x96xf32>
    %30 = vector.extract_strided_slice %29 {offsets = [0, 0], sizes = [16, 32], strides = [1, 1]} : vector<16x96xf32> to vector<16x32xf32>
    %31 = vector.shape_cast %30 : vector<16x32xf32> to vector<2x8x32xf32>
    %32 = vector.extract_strided_slice %29 {offsets = [0, 32], sizes = [16, 32], strides = [1, 1]} : vector<16x96xf32> to vector<16x32xf32>
    %33 = vector.shape_cast %32 : vector<16x32xf32> to vector<2x8x32xf32>
    %34 = vector.extract_strided_slice %29 {offsets = [0, 64], sizes = [16, 32], strides = [1, 1]} : vector<16x96xf32> to vector<16x32xf32>
    %35 = vector.shape_cast %34 : vector<16x32xf32> to vector<2x8x32xf32>
    %36 = vector.extract_strided_slice %31 {offsets = [0, 0, 0], sizes = [2, 8, 8], strides = [1, 1, 1]} : vector<2x8x32xf32> to vector<2x8x8xf32>
    %37 = vector.extract_strided_slice %33 {offsets = [0, 0, 0], sizes = [2, 8, 8], strides = [1, 1, 1]} : vector<2x8x32xf32> to vector<2x8x8xf32>
    %38 = vector.extract_strided_slice %35 {offsets = [0, 0, 0], sizes = [2, 8, 8], strides = [1, 1, 1]} : vector<2x8x32xf32> to vector<2x8x8xf32>
    "tpu.trace_start"() <{level = 10 : i32, message = "bqd,bkd->bqk"}> : () -> ()
    %cst_42 = arith.constant dense<0.000000e+00> : vector<2x8x8xf32>
    %39 = tpu.matmul %36, %37, %cst_42 {dimension_numbers = #tpu.dot_dimension_numbers<[2], [2], [1], [1], [0, 0, 0, 1, 1, 1], [0], [0]>} : vector<2x8x8xf32>, vector<2x8x8xf32>, vector<2x8x8xf32> -> vector<2x8x8xf32>
    "tpu.trace_stop"() : () -> ()
    %cst_43 = arith.constant 0.353553385 : f32
    %40 = vector.broadcast %cst_43 : f32 to vector<2x8x8xf32>
    %41 = arith.mulf %39, %40 : vector<2x8x8xf32>
    %cst_44 = arith.constant dense<0xFF800000> : vector<2x8xf32>
    %42 = vector.multi_reduction <maximumf>, %41, %cst_44 [2] : vector<2x8x8xf32> to vector<2x8xf32>
    %43 = vector.shape_cast %42 : vector<2x8xf32> to vector<2x8x1xf32>
    %44 = vector.broadcast %43 : vector<2x8x1xf32> to vector<2x8x8xf32>
    %45 = arith.subf %41, %44 : vector<2x8x8xf32>
    %46 = math.exp %45 : vector<2x8x8xf32>
    %cst_45 = arith.constant dense<0.000000e+00> : vector<2x8xf32>
    %47 = vector.multi_reduction <add>, %46, %cst_45 [2] : vector<2x8x8xf32> to vector<2x8xf32>
    %48 = vector.shape_cast %47 : vector<2x8xf32> to vector<2x8x1xf32>
    %49 = tpu.reciprocal %48 : vector<2x8x1xf32> -> vector<2x8x1xf32>
    %50 = vector.broadcast %49 : vector<2x8x1xf32> to vector<2x8x8xf32>
    %51 = arith.mulf %46, %50 : vector<2x8x8xf32>
    "tpu.trace_start"() <{level = 10 : i32, message = "bqk,bkd->bqd"}> : () -> ()
    %cst_46 = arith.constant dense<0.000000e+00> : vector<2x8x8xf32>
    %52 = tpu.matmul %51, %38, %cst_46 {dimension_numbers = #tpu.dot_dimension_numbers<[2], [1], [1], [2], [0, 0, 0, 1, 1, 2], [0], [0]>} : vector<2x8x8xf32>, vector<2x8x8xf32>, vector<2x8x8xf32> -> vector<2x8x8xf32>
    "tpu.trace_stop"() : () -> ()
    %53 = vector.shape_cast %52 : vector<2x8x8xf32> to vector<16x8xf32>
    %54 = vector.extract_strided_slice %31 {offsets = [0, 0, 8], sizes = [2, 8, 8], strides = [1, 1, 1]} : vector<2x8x32xf32> to vector<2x8x8xf32>
    %55 = vector.extract_strided_slice %33 {offsets = [0, 0, 8], sizes = [2, 8, 8], strides = [1, 1, 1]} : vector<2x8x32xf32> to vector<2x8x8xf32>
    %56 = vector.extract_strided_slice %35 {offsets = [0, 0, 8], sizes = [2, 8, 8], strides = [1, 1, 1]} : vector<2x8x32xf32> to vector<2x8x8xf32>
    "tpu.trace_start"() <{level = 10 : i32, message = "bqd,bkd->bqk"}> : () -> ()
    %cst_47 = arith.constant dense<0.000000e+00> : vector<2x8x8xf32>
    %57 = tpu.matmul %54, %55, %cst_47 {dimension_numbers = #tpu.dot_dimension_numbers<[2], [2], [1], [1], [0, 0, 0, 1, 1, 1], [0], [0]>} : vector<2x8x8xf32>, vector<2x8x8xf32>, vector<2x8x8xf32> -> vector<2x8x8xf32>
    "tpu.trace_stop"() : () -> ()
    %cst_48 = arith.constant 0.353553385 : f32
    %58 = vector.broadcast %cst_48 : f32 to vector<2x8x8xf32>
    %59 = arith.mulf %57, %58 : vector<2x8x8xf32>
    %cst_49 = arith.constant dense<0xFF800000> : vector<2x8xf32>
    %60 = vector.multi_reduction <maximumf>, %59, %cst_49 [2] : vector<2x8x8xf32> to vector<2x8xf32>
    %61 = vector.shape_cast %60 : vector<2x8xf32> to vector<2x8x1xf32>
    %62 = vector.broadcast %61 : vector<2x8x1xf32> to vector<2x8x8xf32>
    %63 = arith.subf %59, %62 : vector<2x8x8xf32>
    %64 = math.exp %63 : vector<2x8x8xf32>
    %cst_50 = arith.constant dense<0.000000e+00> : vector<2x8xf32>
    %65 = vector.multi_reduction <add>, %64, %cst_50 [2] : vector<2x8x8xf32> to vector<2x8xf32>
    %66 = vector.shape_cast %65 : vector<2x8xf32> to vector<2x8x1xf32>
    %67 = tpu.reciprocal %66 : vector<2x8x1xf32> -> vector<2x8x1xf32>
    %68 = vector.broadcast %67 : vector<2x8x1xf32> to vector<2x8x8xf32>
    %69 = arith.mulf %64, %68 : vector<2x8x8xf32>
    "tpu.trace_start"() <{level = 10 : i32, message = "bqk,bkd->bqd"}> : () -> ()
    %cst_51 = arith.constant dense<0.000000e+00> : vector<2x8x8xf32>
    %70 = tpu.matmul %69, %56, %cst_51 {dimension_numbers = #tpu.dot_dimension_numbers<[2], [1], [1], [2], [0, 0, 0, 1, 1, 2], [0], [0]>} : vector<2x8x8xf32>, vector<2x8x8xf32>, vector<2x8x8xf32> -> vector<2x8x8xf32>
    "tpu.trace_stop"() : () -> ()
    %71 = vector.shape_cast %70 : vector<2x8x8xf32> to vector<16x8xf32>
    %72 = vector.extract_strided_slice %31 {offsets = [0, 0, 16], sizes = [2, 8, 8], strides = [1, 1, 1]} : vector<2x8x32xf32> to vector<2x8x8xf32>
    %73 = vector.extract_strided_slice %33 {offsets = [0, 0, 16], sizes = [2, 8, 8], strides = [1, 1, 1]} : vector<2x8x32xf32> to vector<2x8x8xf32>
    %74 = vector.extract_strided_slice %35 {offsets = [0, 0, 16], sizes = [2, 8, 8], strides = [1, 1, 1]} : vector<2x8x32xf32> to vector<2x8x8xf32>
    "tpu.trace_start"() <{level = 10 : i32, message = "bqd,bkd->bqk"}> : () -> ()
    %cst_52 = arith.constant dense<0.000000e+00> : vector<2x8x8xf32>
    %75 = tpu.matmul %72, %73, %cst_52 {dimension_numbers = #tpu.dot_dimension_numbers<[2], [2], [1], [1], [0, 0, 0, 1, 1, 1], [0], [0]>} : vector<2x8x8xf32>, vector<2x8x8xf32>, vector<2x8x8xf32> -> vector<2x8x8xf32>
    "tpu.trace_stop"() : () -> ()
    %cst_53 = arith.constant 0.353553385 : f32
    %76 = vector.broadcast %cst_53 : f32 to vector<2x8x8xf32>
    %77 = arith.mulf %75, %76 : vector<2x8x8xf32>
    %cst_54 = arith.constant dense<0xFF800000> : vector<2x8xf32>
    %78 = vector.multi_reduction <maximumf>, %77, %cst_54 [2] : vector<2x8x8xf32> to vector<2x8xf32>
    %79 = vector.shape_cast %78 : vector<2x8xf32> to vector<2x8x1xf32>
    %80 = vector.broadcast %79 : vector<2x8x1xf32> to vector<2x8x8xf32>
    %81 = arith.subf %77, %80 : vector<2x8x8xf32>
    %82 = math.exp %81 : vector<2x8x8xf32>
    %cst_55 = arith.constant dense<0.000000e+00> : vector<2x8xf32>
    %83 = vector.multi_reduction <add>, %82, %cst_55 [2] : vector<2x8x8xf32> to vector<2x8xf32>
    %84 = vector.shape_cast %83 : vector<2x8xf32> to vector<2x8x1xf32>
    %85 = tpu.reciprocal %84 : vector<2x8x1xf32> -> vector<2x8x1xf32>
    %86 = vector.broadcast %85 : vector<2x8x1xf32> to vector<2x8x8xf32>
    %87 = arith.mulf %82, %86 : vector<2x8x8xf32>
    "tpu.trace_start"() <{level = 10 : i32, message = "bqk,bkd->bqd"}> : () -> ()
    %cst_56 = arith.constant dense<0.000000e+00> : vector<2x8x8xf32>
    %88 = tpu.matmul %87, %74, %cst_56 {dimension_numbers = #tpu.dot_dimension_numbers<[2], [1], [1], [2], [0, 0, 0, 1, 1, 2], [0], [0]>} : vector<2x8x8xf32>, vector<2x8x8xf32>, vector<2x8x8xf32> -> vector<2x8x8xf32>
    "tpu.trace_stop"() : () -> ()
    %89 = vector.shape_cast %88 : vector<2x8x8xf32> to vector<16x8xf32>
    %90 = vector.extract_strided_slice %31 {offsets = [0, 0, 24], sizes = [2, 8, 8], strides = [1, 1, 1]} : vector<2x8x32xf32> to vector<2x8x8xf32>
    %91 = vector.extract_strided_slice %33 {offsets = [0, 0, 24], sizes = [2, 8, 8], strides = [1, 1, 1]} : vector<2x8x32xf32> to vector<2x8x8xf32>
    %92 = vector.extract_strided_slice %35 {offsets = [0, 0, 24], sizes = [2, 8, 8], strides = [1, 1, 1]} : vector<2x8x32xf32> to vector<2x8x8xf32>
    "tpu.trace_start"() <{level = 10 : i32, message = "bqd,bkd->bqk"}> : () -> ()
    %cst_57 = arith.constant dense<0.000000e+00> : vector<2x8x8xf32>
    %93 = tpu.matmul %90, %91, %cst_57 {dimension_numbers = #tpu.dot_dimension_numbers<[2], [2], [1], [1], [0, 0, 0, 1, 1, 1], [0], [0]>} : vector<2x8x8xf32>, vector<2x8x8xf32>, vector<2x8x8xf32> -> vector<2x8x8xf32>
    "tpu.trace_stop"() : () -> ()
    %cst_58 = arith.constant 0.353553385 : f32
    %94 = vector.broadcast %cst_58 : f32 to vector<2x8x8xf32>
    %95 = arith.mulf %93, %94 : vector<2x8x8xf32>
    %cst_59 = arith.constant dense<0xFF800000> : vector<2x8xf32>
    %96 = vector.multi_reduction <maximumf>, %95, %cst_59 [2] : vector<2x8x8xf32> to vector<2x8xf32>
    %97 = vector.shape_cast %96 : vector<2x8xf32> to vector<2x8x1xf32>
    %98 = vector.broadcast %97 : vector<2x8x1xf32> to vector<2x8x8xf32>
    %99 = arith.subf %95, %98 : vector<2x8x8xf32>
    %100 = math.exp %99 : vector<2x8x8xf32>
    %cst_60 = arith.constant dense<0.000000e+00> : vector<2x8xf32>
    %101 = vector.multi_reduction <add>, %100, %cst_60 [2] : vector<2x8x8xf32> to vector<2x8xf32>
    %102 = vector.shape_cast %101 : vector<2x8xf32> to vector<2x8x1xf32>
    %103 = tpu.reciprocal %102 : vector<2x8x1xf32> -> vector<2x8x1xf32>
    %104 = vector.broadcast %103 : vector<2x8x1xf32> to vector<2x8x8xf32>
    %105 = arith.mulf %100, %104 : vector<2x8x8xf32>
    "tpu.trace_start"() <{level = 10 : i32, message = "bqk,bkd->bqd"}> : () -> ()
    %cst_61 = arith.constant dense<0.000000e+00> : vector<2x8x8xf32>
    %106 = tpu.matmul %105, %92, %cst_61 {dimension_numbers = #tpu.dot_dimension_numbers<[2], [1], [1], [2], [0, 0, 0, 1, 1, 2], [0], [0]>} : vector<2x8x8xf32>, vector<2x8x8xf32>, vector<2x8x8xf32> -> vector<2x8x8xf32>
    "tpu.trace_stop"() : () -> ()
    %107 = vector.shape_cast %106 : vector<2x8x8xf32> to vector<16x8xf32>
    %108 = tpu.concatenate %53, %71, %89, %107 in 1 : vector<16x8xf32>, vector<16x8xf32>, vector<16x8xf32>, vector<16x8xf32> -> vector<16x32xf32>
    %cst_62 = arith.constant dense<0.000000e+00> : vector<16x32xf32>
    %109 = tpu.matmul %108, %7, %cst_62 {dimension_numbers = #tpu.dot_dimension_numbers<[1], [0], [0], [1], [0, 0, 1, 1], [], []>} : vector<16x32xf32>, vector<32x32xf32>, vector<16x32xf32> -> vector<16x32xf32>
    %110 = arith.addf %109, %15 : vector<16x32xf32>
    %111 = arith.addf %3, %110 : vector<16x32xf32>
    %cst_63 = arith.constant dense<0.000000e+00> : vector<16xf32>
    %112 = vector.multi_reduction <add>, %111, %cst_63 [1] : vector<16x32xf32> to vector<16xf32>
    %113 = vector.shape_cast %112 : vector<16xf32> to vector<16x1xf32>
    %cst_64 = arith.constant 3.200000e+01 : f32
    %114 = vector.broadcast %cst_64 : f32 to vector<16x1xf32>
    %115 = arith.divf %113, %114 : vector<16x1xf32>
    %116 = arith.mulf %111, %111 : vector<16x32xf32>
    %cst_65 = arith.constant dense<0.000000e+00> : vector<16xf32>
    %117 = vector.multi_reduction <add>, %116, %cst_65 [1] : vector<16x32xf32> to vector<16xf32>
    %118 = vector.shape_cast %117 : vector<16xf32> to vector<16x1xf32>
    %cst_66 = arith.constant 3.200000e+01 : f32
    %119 = vector.broadcast %cst_66 : f32 to vector<16x1xf32>
    %120 = arith.divf %118, %119 : vector<16x1xf32>
    %121 = arith.mulf %115, %115 : vector<16x1xf32>
    %122 = arith.subf %120, %121 : vector<16x1xf32>
    %123 = vector.broadcast %115 : vector<16x1xf32> to vector<16x32xf32>
    %124 = arith.subf %111, %123 : vector<16x32xf32>
    %cst_67 = arith.constant 9.99999974E-6 : f32
    %125 = vector.broadcast %cst_67 : f32 to vector<16x1xf32>
    %126 = arith.addf %122, %125 : vector<16x1xf32>
    %127 = math.rsqrt %126 : vector<16x1xf32>
    %128 = vector.broadcast %127 : vector<16x1xf32> to vector<16x32xf32>
    %129 = arith.mulf %124, %128 : vector<16x32xf32>
    %130 = arith.mulf %129, %21 : vector<16x32xf32>
    %131 = arith.addf %130, %23 : vector<16x32xf32>
    %cst_68 = arith.constant dense<0.000000e+00> : vector<16x64xf32>
    %132 = tpu.matmul %131, %9, %cst_68 {dimension_numbers = #tpu.dot_dimension_numbers<[1], [0], [0], [1], [0, 0, 1, 1], [], []>} : vector<16x32xf32>, vector<32x64xf32>, vector<16x64xf32> -> vector<16x64xf32>
    %133 = arith.addf %132, %17 : vector<16x64xf32>
    %cst_69 = arith.constant 0.000000e+00 : f32
    %134 = vector.broadcast %cst_69 : f32 to vector<16x64xf32>
    %135 = arith.maximumf %133, %134 : vector<16x64xf32>
    %cst_70 = arith.constant dense<0.000000e+00> : vector<16x32xf32>
    %136 = tpu.matmul %135, %11, %cst_70 {dimension_numbers = #tpu.dot_dimension_numbers<[1], [0], [0], [1], [0, 0, 1, 1], [], []>} : vector<16x64xf32>, vector<64x32xf32>, vector<16x32xf32> -> vector<16x32xf32>
    %137 = arith.addf %136, %19 : vector<16x32xf32>
    %138 = arith.addf %131, %137 : vector<16x32xf32>
    %cst_71 = arith.constant dense<0.000000e+00> : vector<16xf32>
    %139 = vector.multi_reduction <add>, %138, %cst_71 [1] : vector<16x32xf32> to vector<16xf32>
    %140 = vector.shape_cast %139 : vector<16xf32> to vector<16x1xf32>
    %cst_72 = arith.constant 3.200000e+01 : f32
    %141 = vector.broadcast %cst_72 : f32 to vector<16x1xf32>
    %142 = arith.divf %140, %141 : vector<16x1xf32>
    %143 = arith.mulf %138, %138 : vector<16x32xf32>
    %cst_73 = arith.constant dense<0.000000e+00> : vector<16xf32>
    %144 = vector.multi_reduction <add>, %143, %cst_73 [1] : vector<16x32xf32> to vector<16xf32>
    %145 = vector.shape_cast %144 : vector<16xf32> to vector<16x1xf32>
    %cst_74 = arith.constant 3.200000e+01 : f32
    %146 = vector.broadcast %cst_74 : f32 to vector<16x1xf32>
    %147 = arith.divf %145, %146 : vector<16x1xf32>
    %148 = arith.mulf %142, %142 : vector<16x1xf32>
    %149 = arith.subf %147, %148 : vector<16x1xf32>
    %150 = vector.broadcast %142 : vector<16x1xf32> to vector<16x32xf32>
    %151 = arith.subf %138, %150 : vector<16x32xf32>
    %cst_75 = arith.constant 9.99999974E-6 : f32
    %152 = vector.broadcast %cst_75 : f32 to vector<16x1xf32>
    %153 = arith.addf %149, %152 : vector<16x1xf32>
    %154 = math.rsqrt %153 : vector<16x1xf32>
    %155 = vector.broadcast %154 : vector<16x1xf32> to vector<16x32xf32>
    %156 = arith.mulf %151, %155 : vector<16x32xf32>
    %157 = arith.mulf %156, %25 : vector<16x32xf32>
    %158 = arith.addf %157, %27 : vector<16x32xf32>
    %c1_76 = arith.constant 1 : index
    %c0_77 = arith.constant 0 : index
    %c0_78 = arith.constant 0 : index
    %159 = vector.load %arg2[%c1_76, %c0_77, %c0_78] : memref<2x32x96xf32, #tpu.memory_space<vmem>>, vector<1x32x96xf32>
    %160 = vector.shape_cast %159 : vector<1x32x96xf32> to vector<32x96xf32>
    %c1_79 = arith.constant 1 : index
    %c0_80 = arith.constant 0 : index
    %c0_81 = arith.constant 0 : index
    %161 = vector.load %arg3[%c1_79, %c0_80, %c0_81] : memref<2x32x32xf32, #tpu.memory_space<vmem>>, vector<1x32x32xf32>
    %162 = vector.shape_cast %161 : vector<1x32x32xf32> to vector<32x32xf32>
    %c1_82 = arith.constant 1 : index
    %c0_83 = arith.constant 0 : index
    %c0_84 = arith.constant 0 : index
    %163 = vector.load %arg4[%c1_82, %c0_83, %c0_84] : memref<2x32x64xf32, #tpu.memory_space<vmem>>, vector<1x32x64xf32>
    %164 = vector.shape_cast %163 : vector<1x32x64xf32> to vector<32x64xf32>
    %c1_85 = arith.constant 1 : index
    %c0_86 = arith.constant 0 : index
    %c0_87 = arith.constant 0 : index
    %165 = vector.load %arg5[%c1_85, %c0_86, %c0_87] : memref<2x64x32xf32, #tpu.memory_space<vmem>>, vector<1x64x32xf32>
    %166 = vector.shape_cast %165 : vector<1x64x32xf32> to vector<64x32xf32>
    %c1_88 = arith.constant 1 : index
    %c0_89 = arith.constant 0 : index
    %c0_90 = arith.constant 0 : index
    %c0_91 = arith.constant 0 : index
    %167 = vector.load %arg6[%c1_88, %c0_89, %c0_90, %c0_91] : memref<2x10x16x96xf32, #tpu.memory_space<vmem>>, vector<1x1x16x96xf32>
    %168 = vector.shape_cast %167 : vector<1x1x16x96xf32> to vector<16x96xf32>
    %c1_92 = arith.constant 1 : index
    %c1_93 = arith.constant 1 : index
    %c0_94 = arith.constant 0 : index
    %c0_95 = arith.constant 0 : index
    %169 = vector.load %arg6[%c1_92, %c1_93, %c0_94, %c0_95] : memref<2x10x16x96xf32, #tpu.memory_space<vmem>>, vector<1x1x16x32xf32>
    %170 = vector.shape_cast %169 : vector<1x1x16x32xf32> to vector<16x32xf32>
    %c1_96 = arith.constant 1 : index
    %c2_97 = arith.constant 2 : index
    %c0_98 = arith.constant 0 : index
    %c0_99 = arith.constant 0 : index
    %171 = vector.load %arg6[%c1_96, %c2_97, %c0_98, %c0_99] : memref<2x10x16x96xf32, #tpu.memory_space<vmem>>, vector<1x1x16x64xf32>
    %172 = vector.shape_cast %171 : vector<1x1x16x64xf32> to vector<16x64xf32>
    %c1_100 = arith.constant 1 : index
    %c3_101 = arith.constant 3 : index
    %c0_102 = arith.constant 0 : index
    %c0_103 = arith.constant 0 : index
    %173 = vector.load %arg6[%c1_100, %c3_101, %c0_102, %c0_103] : memref<2x10x16x96xf32, #tpu.memory_space<vmem>>, vector<1x1x16x32xf32>
    %174 = vector.shape_cast %173 : vector<1x1x16x32xf32> to vector<16x32xf32>
    %c1_104 = arith.constant 1 : index
    %c4_105 = arith.constant 4 : index
    %c0_106 = arith.constant 0 : index
    %c0_107 = arith.constant 0 : index
    %175 = vector.load %arg6[%c1_104, %c4_105, %c0_106, %c0_107] : memref<2x10x16x96xf32, #tpu.memory_space<vmem>>, vector<1x1x16x32xf32>
    %176 = vector.shape_cast %175 : vector<1x1x16x32xf32> to vector<16x32xf32>
    %c1_108 = arith.constant 1 : index
    %c5_109 = arith.constant 5 : index
    %c0_110 = arith.constant 0 : index
    %c0_111 = arith.constant 0 : index
    %177 = vector.load %arg6[%c1_108, %c5_109, %c0_110, %c0_111] : memref<2x10x16x96xf32, #tpu.memory_space<vmem>>, vector<1x1x16x32xf32>
    %178 = vector.shape_cast %177 : vector<1x1x16x32xf32> to vector<16x32xf32>
    %c1_112 = arith.constant 1 : index
    %c6_113 = arith.constant 6 : index
    %c0_114 = arith.constant 0 : index
    %c0_115 = arith.constant 0 : index
    %179 = vector.load %arg6[%c1_112, %c6_113, %c0_114, %c0_115] : memref<2x10x16x96xf32, #tpu.memory_space<vmem>>, vector<1x1x16x32xf32>
    %180 = vector.shape_cast %179 : vector<1x1x16x32xf32> to vector<16x32xf32>
    %c1_116 = arith.constant 1 : index
    %c7_117 = arith.constant 7 : index
    %c0_118 = arith.constant 0 : index
    %c0_119 = arith.constant 0 : index
    %181 = vector.load %arg6[%c1_116, %c7_117, %c0_118, %c0_119] : memref<2x10x16x96xf32, #tpu.memory_space<vmem>>, vector<1x1x16x32xf32>
    %182 = vector.shape_cast %181 : vector<1x1x16x32xf32> to vector<16x32xf32>
    %cst_120 = arith.constant dense<0.000000e+00> : vector<16x96xf32>
    %183 = tpu.matmul %158, %160, %cst_120 {dimension_numbers = #tpu.dot_dimension_numbers<[1], [0], [0], [1], [0, 0, 1, 1], [], []>} : vector<16x32xf32>, vector<32x96xf32>, vector<16x96xf32> -> vector<16x96xf32>
    %184 = arith.addf %183, %168 : vector<16x96xf32>
    %185 = vector.extract_strided_slice %184 {offsets = [0, 0], sizes = [16, 32], strides = [1, 1]} : vector<16x96xf32> to vector<16x32xf32>
    %186 = vector.shape_cast %185 : vector<16x32xf32> to vector<2x8x32xf32>
    %187 = vector.extract_strided_slice %184 {offsets = [0, 32], sizes = [16, 32], strides = [1, 1]} : vector<16x96xf32> to vector<16x32xf32>
    %188 = vector.shape_cast %187 : vector<16x32xf32> to vector<2x8x32xf32>
    %189 = vector.extract_strided_slice %184 {offsets = [0, 64], sizes = [16, 32], strides = [1, 1]} : vector<16x96xf32> to vector<16x32xf32>
    %190 = vector.shape_cast %189 : vector<16x32xf32> to vector<2x8x32xf32>
    %191 = vector.extract_strided_slice %186 {offsets = [0, 0, 0], sizes = [2, 8, 8], strides = [1, 1, 1]} : vector<2x8x32xf32> to vector<2x8x8xf32>
    %192 = vector.extract_strided_slice %188 {offsets = [0, 0, 0], sizes = [2, 8, 8], strides = [1, 1, 1]} : vector<2x8x32xf32> to vector<2x8x8xf32>
    %193 = vector.extract_strided_slice %190 {offsets = [0, 0, 0], sizes = [2, 8, 8], strides = [1, 1, 1]} : vector<2x8x32xf32> to vector<2x8x8xf32>
    "tpu.trace_start"() <{level = 10 : i32, message = "bqd,bkd->bqk"}> : () -> ()
    %cst_121 = arith.constant dense<0.000000e+00> : vector<2x8x8xf32>
    %194 = tpu.matmul %191, %192, %cst_121 {dimension_numbers = #tpu.dot_dimension_numbers<[2], [2], [1], [1], [0, 0, 0, 1, 1, 1], [0], [0]>} : vector<2x8x8xf32>, vector<2x8x8xf32>, vector<2x8x8xf32> -> vector<2x8x8xf32>
    "tpu.trace_stop"() : () -> ()
    %cst_122 = arith.constant 0.353553385 : f32
    %195 = vector.broadcast %cst_122 : f32 to vector<2x8x8xf32>
    %196 = arith.mulf %194, %195 : vector<2x8x8xf32>
    %cst_123 = arith.constant dense<0xFF800000> : vector<2x8xf32>
    %197 = vector.multi_reduction <maximumf>, %196, %cst_123 [2] : vector<2x8x8xf32> to vector<2x8xf32>
    %198 = vector.shape_cast %197 : vector<2x8xf32> to vector<2x8x1xf32>
    %199 = vector.broadcast %198 : vector<2x8x1xf32> to vector<2x8x8xf32>
    %200 = arith.subf %196, %199 : vector<2x8x8xf32>
    %201 = math.exp %200 : vector<2x8x8xf32>
    %cst_124 = arith.constant dense<0.000000e+00> : vector<2x8xf32>
    %202 = vector.multi_reduction <add>, %201, %cst_124 [2] : vector<2x8x8xf32> to vector<2x8xf32>
    %203 = vector.shape_cast %202 : vector<2x8xf32> to vector<2x8x1xf32>
    %204 = tpu.reciprocal %203 : vector<2x8x1xf32> -> vector<2x8x1xf32>
    %205 = vector.broadcast %204 : vector<2x8x1xf32> to vector<2x8x8xf32>
    %206 = arith.mulf %201, %205 : vector<2x8x8xf32>
    "tpu.trace_start"() <{level = 10 : i32, message = "bqk,bkd->bqd"}> : () -> ()
    %cst_125 = arith.constant dense<0.000000e+00> : vector<2x8x8xf32>
    %207 = tpu.matmul %206, %193, %cst_125 {dimension_numbers = #tpu.dot_dimension_numbers<[2], [1], [1], [2], [0, 0, 0, 1, 1, 2], [0], [0]>} : vector<2x8x8xf32>, vector<2x8x8xf32>, vector<2x8x8xf32> -> vector<2x8x8xf32>
    "tpu.trace_stop"() : () -> ()
    %208 = vector.shape_cast %207 : vector<2x8x8xf32> to vector<16x8xf32>
    %209 = vector.extract_strided_slice %186 {offsets = [0, 0, 8], sizes = [2, 8, 8], strides = [1, 1, 1]} : vector<2x8x32xf32> to vector<2x8x8xf32>
    %210 = vector.extract_strided_slice %188 {offsets = [0, 0, 8], sizes = [2, 8, 8], strides = [1, 1, 1]} : vector<2x8x32xf32> to vector<2x8x8xf32>
    %211 = vector.extract_strided_slice %190 {offsets = [0, 0, 8], sizes = [2, 8, 8], strides = [1, 1, 1]} : vector<2x8x32xf32> to vector<2x8x8xf32>
    "tpu.trace_start"() <{level = 10 : i32, message = "bqd,bkd->bqk"}> : () -> ()
    %cst_126 = arith.constant dense<0.000000e+00> : vector<2x8x8xf32>
    %212 = tpu.matmul %209, %210, %cst_126 {dimension_numbers = #tpu.dot_dimension_numbers<[2], [2], [1], [1], [0, 0, 0, 1, 1, 1], [0], [0]>} : vector<2x8x8xf32>, vector<2x8x8xf32>, vector<2x8x8xf32> -> vector<2x8x8xf32>
    "tpu.trace_stop"() : () -> ()
    %cst_127 = arith.constant 0.353553385 : f32
    %213 = vector.broadcast %cst_127 : f32 to vector<2x8x8xf32>
    %214 = arith.mulf %212, %213 : vector<2x8x8xf32>
    %cst_128 = arith.constant dense<0xFF800000> : vector<2x8xf32>
    %215 = vector.multi_reduction <maximumf>, %214, %cst_128 [2] : vector<2x8x8xf32> to vector<2x8xf32>
    %216 = vector.shape_cast %215 : vector<2x8xf32> to vector<2x8x1xf32>
    %217 = vector.broadcast %216 : vector<2x8x1xf32> to vector<2x8x8xf32>
    %218 = arith.subf %214, %217 : vector<2x8x8xf32>
    %219 = math.exp %218 : vector<2x8x8xf32>
    %cst_129 = arith.constant dense<0.000000e+00> : vector<2x8xf32>
    %220 = vector.multi_reduction <add>, %219, %cst_129 [2] : vector<2x8x8xf32> to vector<2x8xf32>
    %221 = vector.shape_cast %220 : vector<2x8xf32> to vector<2x8x1xf32>
    %222 = tpu.reciprocal %221 : vector<2x8x1xf32> -> vector<2x8x1xf32>
    %223 = vector.broadcast %222 : vector<2x8x1xf32> to vector<2x8x8xf32>
    %224 = arith.mulf %219, %223 : vector<2x8x8xf32>
    "tpu.trace_start"() <{level = 10 : i32, message = "bqk,bkd->bqd"}> : () -> ()
    %cst_130 = arith.constant dense<0.000000e+00> : vector<2x8x8xf32>
    %225 = tpu.matmul %224, %211, %cst_130 {dimension_numbers = #tpu.dot_dimension_numbers<[2], [1], [1], [2], [0, 0, 0, 1, 1, 2], [0], [0]>} : vector<2x8x8xf32>, vector<2x8x8xf32>, vector<2x8x8xf32> -> vector<2x8x8xf32>
    "tpu.trace_stop"() : () -> ()
    %226 = vector.shape_cast %225 : vector<2x8x8xf32> to vector<16x8xf32>
    %227 = vector.extract_strided_slice %186 {offsets = [0, 0, 16], sizes = [2, 8, 8], strides = [1, 1, 1]} : vector<2x8x32xf32> to vector<2x8x8xf32>
    %228 = vector.extract_strided_slice %188 {offsets = [0, 0, 16], sizes = [2, 8, 8], strides = [1, 1, 1]} : vector<2x8x32xf32> to vector<2x8x8xf32>
    %229 = vector.extract_strided_slice %190 {offsets = [0, 0, 16], sizes = [2, 8, 8], strides = [1, 1, 1]} : vector<2x8x32xf32> to vector<2x8x8xf32>
    "tpu.trace_start"() <{level = 10 : i32, message = "bqd,bkd->bqk"}> : () -> ()
    %cst_131 = arith.constant dense<0.000000e+00> : vector<2x8x8xf32>
    %230 = tpu.matmul %227, %228, %cst_131 {dimension_numbers = #tpu.dot_dimension_numbers<[2], [2], [1], [1], [0, 0, 0, 1, 1, 1], [0], [0]>} : vector<2x8x8xf32>, vector<2x8x8xf32>, vector<2x8x8xf32> -> vector<2x8x8xf32>
    "tpu.trace_stop"() : () -> ()
    %cst_132 = arith.constant 0.353553385 : f32
    %231 = vector.broadcast %cst_132 : f32 to vector<2x8x8xf32>
    %232 = arith.mulf %230, %231 : vector<2x8x8xf32>
    %cst_133 = arith.constant dense<0xFF800000> : vector<2x8xf32>
    %233 = vector.multi_reduction <maximumf>, %232, %cst_133 [2] : vector<2x8x8xf32> to vector<2x8xf32>
    %234 = vector.shape_cast %233 : vector<2x8xf32> to vector<2x8x1xf32>
    %235 = vector.broadcast %234 : vector<2x8x1xf32> to vector<2x8x8xf32>
    %236 = arith.subf %232, %235 : vector<2x8x8xf32>
    %237 = math.exp %236 : vector<2x8x8xf32>
    %cst_134 = arith.constant dense<0.000000e+00> : vector<2x8xf32>
    %238 = vector.multi_reduction <add>, %237, %cst_134 [2] : vector<2x8x8xf32> to vector<2x8xf32>
    %239 = vector.shape_cast %238 : vector<2x8xf32> to vector<2x8x1xf32>
    %240 = tpu.reciprocal %239 : vector<2x8x1xf32> -> vector<2x8x1xf32>
    %241 = vector.broadcast %240 : vector<2x8x1xf32> to vector<2x8x8xf32>
    %242 = arith.mulf %237, %241 : vector<2x8x8xf32>
    "tpu.trace_start"() <{level = 10 : i32, message = "bqk,bkd->bqd"}> : () -> ()
    %cst_135 = arith.constant dense<0.000000e+00> : vector<2x8x8xf32>
    %243 = tpu.matmul %242, %229, %cst_135 {dimension_numbers = #tpu.dot_dimension_numbers<[2], [1], [1], [2], [0, 0, 0, 1, 1, 2], [0], [0]>} : vector<2x8x8xf32>, vector<2x8x8xf32>, vector<2x8x8xf32> -> vector<2x8x8xf32>
    "tpu.trace_stop"() : () -> ()
    %244 = vector.shape_cast %243 : vector<2x8x8xf32> to vector<16x8xf32>
    %245 = vector.extract_strided_slice %186 {offsets = [0, 0, 24], sizes = [2, 8, 8], strides = [1, 1, 1]} : vector<2x8x32xf32> to vector<2x8x8xf32>
    %246 = vector.extract_strided_slice %188 {offsets = [0, 0, 24], sizes = [2, 8, 8], strides = [1, 1, 1]} : vector<2x8x32xf32> to vector<2x8x8xf32>
    %247 = vector.extract_strided_slice %190 {offsets = [0, 0, 24], sizes = [2, 8, 8], strides = [1, 1, 1]} : vector<2x8x32xf32> to vector<2x8x8xf32>
    "tpu.trace_start"() <{level = 10 : i32, message = "bqd,bkd->bqk"}> : () -> ()
    %cst_136 = arith.constant dense<0.000000e+00> : vector<2x8x8xf32>
    %248 = tpu.matmul %245, %246, %cst_136 {dimension_numbers = #tpu.dot_dimension_numbers<[2], [2], [1], [1], [0, 0, 0, 1, 1, 1], [0], [0]>} : vector<2x8x8xf32>, vector<2x8x8xf32>, vector<2x8x8xf32> -> vector<2x8x8xf32>
    "tpu.trace_stop"() : () -> ()
    %cst_137 = arith.constant 0.353553385 : f32
    %249 = vector.broadcast %cst_137 : f32 to vector<2x8x8xf32>
    %250 = arith.mulf %248, %249 : vector<2x8x8xf32>
    %cst_138 = arith.constant dense<0xFF800000> : vector<2x8xf32>
    %251 = vector.multi_reduction <maximumf>, %250, %cst_138 [2] : vector<2x8x8xf32> to vector<2x8xf32>
    %252 = vector.shape_cast %251 : vector<2x8xf32> to vector<2x8x1xf32>
    %253 = vector.broadcast %252 : vector<2x8x1xf32> to vector<2x8x8xf32>
    %254 = arith.subf %250, %253 : vector<2x8x8xf32>
    %255 = math.exp %254 : vector<2x8x8xf32>
    %cst_139 = arith.constant dense<0.000000e+00> : vector<2x8xf32>
    %256 = vector.multi_reduction <add>, %255, %cst_139 [2] : vector<2x8x8xf32> to vector<2x8xf32>
    %257 = vector.shape_cast %256 : vector<2x8xf32> to vector<2x8x1xf32>
    %258 = tpu.reciprocal %257 : vector<2x8x1xf32> -> vector<2x8x1xf32>
    %259 = vector.broadcast %258 : vector<2x8x1xf32> to vector<2x8x8xf32>
    %260 = arith.mulf %255, %259 : vector<2x8x8xf32>
    "tpu.trace_start"() <{level = 10 : i32, message = "bqk,bkd->bqd"}> : () -> ()
    %cst_140 = arith.constant dense<0.000000e+00> : vector<2x8x8xf32>
    %261 = tpu.matmul %260, %247, %cst_140 {dimension_numbers = #tpu.dot_dimension_numbers<[2], [1], [1], [2], [0, 0, 0, 1, 1, 2], [0], [0]>} : vector<2x8x8xf32>, vector<2x8x8xf32>, vector<2x8x8xf32> -> vector<2x8x8xf32>
    "tpu.trace_stop"() : () -> ()
    %262 = vector.shape_cast %261 : vector<2x8x8xf32> to vector<16x8xf32>
    %263 = tpu.concatenate %208, %226, %244, %262 in 1 : vector<16x8xf32>, vector<16x8xf32>, vector<16x8xf32>, vector<16x8xf32> -> vector<16x32xf32>
    %cst_141 = arith.constant dense<0.000000e+00> : vector<16x32xf32>
    %264 = tpu.matmul %263, %162, %cst_141 {dimension_numbers = #tpu.dot_dimension_numbers<[1], [0], [0], [1], [0, 0, 1, 1], [], []>} : vector<16x32xf32>, vector<32x32xf32>, vector<16x32xf32> -> vector<16x32xf32>
    %265 = arith.addf %264, %170 : vector<16x32xf32>
    %266 = arith.addf %158, %265 : vector<16x32xf32>
    %cst_142 = arith.constant dense<0.000000e+00> : vector<16xf32>
    %267 = vector.multi_reduction <add>, %266, %cst_142 [1] : vector<16x32xf32> to vector<16xf32>
    %268 = vector.shape_cast %267 : vector<16xf32> to vector<16x1xf32>
    %cst_143 = arith.constant 3.200000e+01 : f32
    %269 = vector.broadcast %cst_143 : f32 to vector<16x1xf32>
    %270 = arith.divf %268, %269 : vector<16x1xf32>
    %271 = arith.mulf %266, %266 : vector<16x32xf32>
    %cst_144 = arith.constant dense<0.000000e+00> : vector<16xf32>
    %272 = vector.multi_reduction <add>, %271, %cst_144 [1] : vector<16x32xf32> to vector<16xf32>
    %273 = vector.shape_cast %272 : vector<16xf32> to vector<16x1xf32>
    %cst_145 = arith.constant 3.200000e+01 : f32
    %274 = vector.broadcast %cst_145 : f32 to vector<16x1xf32>
    %275 = arith.divf %273, %274 : vector<16x1xf32>
    %276 = arith.mulf %270, %270 : vector<16x1xf32>
    %277 = arith.subf %275, %276 : vector<16x1xf32>
    %278 = vector.broadcast %270 : vector<16x1xf32> to vector<16x32xf32>
    %279 = arith.subf %266, %278 : vector<16x32xf32>
    %cst_146 = arith.constant 9.99999974E-6 : f32
    %280 = vector.broadcast %cst_146 : f32 to vector<16x1xf32>
    %281 = arith.addf %277, %280 : vector<16x1xf32>
    %282 = math.rsqrt %281 : vector<16x1xf32>
    %283 = vector.broadcast %282 : vector<16x1xf32> to vector<16x32xf32>
    %284 = arith.mulf %279, %283 : vector<16x32xf32>
    %285 = arith.mulf %284, %176 : vector<16x32xf32>
    %286 = arith.addf %285, %178 : vector<16x32xf32>
    %cst_147 = arith.constant dense<0.000000e+00> : vector<16x64xf32>
    %287 = tpu.matmul %286, %164, %cst_147 {dimension_numbers = #tpu.dot_dimension_numbers<[1], [0], [0], [1], [0, 0, 1, 1], [], []>} : vector<16x32xf32>, vector<32x64xf32>, vector<16x64xf32> -> vector<16x64xf32>
    %288 = arith.addf %287, %172 : vector<16x64xf32>
    %cst_148 = arith.constant 0.000000e+00 : f32
    %289 = vector.broadcast %cst_148 : f32 to vector<16x64xf32>
    %290 = arith.maximumf %288, %289 : vector<16x64xf32>
    %cst_149 = arith.constant dense<0.000000e+00> : vector<16x32xf32>
    %291 = tpu.matmul %290, %166, %cst_149 {dimension_numbers = #tpu.dot_dimension_numbers<[1], [0], [0], [1], [0, 0, 1, 1], [], []>} : vector<16x64xf32>, vector<64x32xf32>, vector<16x32xf32> -> vector<16x32xf32>
    %292 = arith.addf %291, %174 : vector<16x32xf32>
    %293 = arith.addf %286, %292 : vector<16x32xf32>
    %cst_150 = arith.constant dense<0.000000e+00> : vector<16xf32>
    %294 = vector.multi_reduction <add>, %293, %cst_150 [1] : vector<16x32xf32> to vector<16xf32>
    %295 = vector.shape_cast %294 : vector<16xf32> to vector<16x1xf32>
    %cst_151 = arith.constant 3.200000e+01 : f32
    %296 = vector.broadcast %cst_151 : f32 to vector<16x1xf32>
    %297 = arith.divf %295, %296 : vector<16x1xf32>
    %298 = arith.mulf %293, %293 : vector<16x32xf32>
    %cst_152 = arith.constant dense<0.000000e+00> : vector<16xf32>
    %299 = vector.multi_reduction <add>, %298, %cst_152 [1] : vector<16x32xf32> to vector<16xf32>
    %300 = vector.shape_cast %299 : vector<16xf32> to vector<16x1xf32>
    %cst_153 = arith.constant 3.200000e+01 : f32
    %301 = vector.broadcast %cst_153 : f32 to vector<16x1xf32>
    %302 = arith.divf %300, %301 : vector<16x1xf32>
    %303 = arith.mulf %297, %297 : vector<16x1xf32>
    %304 = arith.subf %302, %303 : vector<16x1xf32>
    %305 = vector.broadcast %297 : vector<16x1xf32> to vector<16x32xf32>
    %306 = arith.subf %293, %305 : vector<16x32xf32>
    %cst_154 = arith.constant 9.99999974E-6 : f32
    %307 = vector.broadcast %cst_154 : f32 to vector<16x1xf32>
    %308 = arith.addf %304, %307 : vector<16x1xf32>
    %309 = math.rsqrt %308 : vector<16x1xf32>
    %310 = vector.broadcast %309 : vector<16x1xf32> to vector<16x32xf32>
    %311 = arith.mulf %306, %310 : vector<16x32xf32>
    %312 = arith.mulf %311, %180 : vector<16x32xf32>
    %313 = arith.addf %312, %182 : vector<16x32xf32>
    %c0_155 = arith.constant 0 : index
    %c8 = arith.constant 8 : index
    %c0_156 = arith.constant 0 : index
    %c0_157 = arith.constant 0 : index
    %314 = vector.load %arg6[%c0_155, %c8, %c0_156, %c0_157] : memref<2x10x16x96xf32, #tpu.memory_space<vmem>>, vector<1x1x16x32xf32>
    %315 = vector.shape_cast %314 : vector<1x1x16x32xf32> to vector<16x32xf32>
    %c0_158 = arith.constant 0 : index
    %c9 = arith.constant 9 : index
    %c0_159 = arith.constant 0 : index
    %c0_160 = arith.constant 0 : index
    %316 = vector.load %arg6[%c0_158, %c9, %c0_159, %c0_160] : memref<2x10x16x96xf32, #tpu.memory_space<vmem>>, vector<1x1x16x32xf32>
    %317 = vector.shape_cast %316 : vector<1x1x16x32xf32> to vector<16x32xf32>
    %cst_161 = arith.constant dense<0.000000e+00> : vector<16xf32>
    %318 = vector.multi_reduction <add>, %313, %cst_161 [1] : vector<16x32xf32> to vector<16xf32>
    %319 = vector.shape_cast %318 : vector<16xf32> to vector<16x1xf32>
    %cst_162 = arith.constant 3.200000e+01 : f32
    %320 = vector.broadcast %cst_162 : f32 to vector<16x1xf32>
    %321 = arith.divf %319, %320 : vector<16x1xf32>
    %322 = arith.mulf %313, %313 : vector<16x32xf32>
    %cst_163 = arith.constant dense<0.000000e+00> : vector<16xf32>
    %323 = vector.multi_reduction <add>, %322, %cst_163 [1] : vector<16x32xf32> to vector<16xf32>
    %324 = vector.shape_cast %323 : vector<16xf32> to vector<16x1xf32>
    %cst_164 = arith.constant 3.200000e+01 : f32
    %325 = vector.broadcast %cst_164 : f32 to vector<16x1xf32>
    %326 = arith.divf %324, %325 : vector<16x1xf32>
    %327 = arith.mulf %321, %321 : vector<16x1xf32>
    %328 = arith.subf %326, %327 : vector<16x1xf32>
    %329 = vector.broadcast %321 : vector<16x1xf32> to vector<16x32xf32>
    %330 = arith.subf %313, %329 : vector<16x32xf32>
    %cst_165 = arith.constant 9.99999974E-6 : f32
    %331 = vector.broadcast %cst_165 : f32 to vector<16x1xf32>
    %332 = arith.addf %328, %331 : vector<16x1xf32>
    %333 = math.rsqrt %332 : vector<16x1xf32>
    %334 = vector.broadcast %333 : vector<16x1xf32> to vector<16x32xf32>
    %335 = arith.mulf %330, %334 : vector<16x32xf32>
    %336 = arith.mulf %335, %315 : vector<16x32xf32>
    %337 = arith.addf %336, %317 : vector<16x32xf32>
    %c1_166 = arith.constant 1 : index
    %c0_167 = arith.constant 0 : index
    %c0_168 = arith.constant 0 : index
    %338 = vector.load %arg1[%c1_166, %c0_167, %c0_168] : memref<2x16x16xf32, #tpu.memory_space<vmem>>, vector<1x16x16xf32>
    %339 = vector.shape_cast %338 : vector<1x16x16xf32> to vector<16x16xf32>
    %cst_169 = arith.constant dense<0.000000e+00> : vector<16x32xf32>
    %340 = tpu.matmul %339, %337, %cst_169 {dimension_numbers = #tpu.dot_dimension_numbers<[1], [0], [0], [1], [0, 0, 1, 1], [], []>} : vector<16x16xf32>, vector<16x32xf32>, vector<16x32xf32> -> vector<16x32xf32>
    %c0_170 = arith.constant 0 : index
    %c0_171 = arith.constant 0 : index
    %341 = vector.load %arg7[%c0_170, %c0_171] : memref<16x32xf32, #tpu.memory_space<vmem>>, vector<16x32xf32>
    tpu.vector_store %arg7[%c0_170, %c0_171], %340 {strides = array<i32>} : memref<16x32xf32, #tpu.memory_space<vmem>>, vector<16x32xf32>,
    return
  }
}

</mosaic_0001>

<bundles_post_ra>
// kernel: _encoder_core.1
= control target key start
LH: loop header
LB: loop body
LE: loop exit
PB: predicated region body
PF: predicated region fallthrough
CT: control target
= control target key end

     0   :  { %12 = vsyncpa [#allocation3], 0  ;;  %s5325_s0 = inlined_call_operand.hbm [shape: f32[16,32], index: 0, kind: input, shape index: {}]   ;;  %s5326_s1 = inlined_call_operand.hbm [shape: f32[2,16,16], index: 1, kind: input, shape index: {}]   ;;  %s5327_s2 = inlined_call_operand.vmem [shape: f32[2,32,96], index: 2, kind: input, shape index: {}]   ;;  %s5328_s3 = inlined_call_operand.vmem [shape: f32[2,32,32], index: 3, kind: input, shape index: {}]   ;;  %s5329_s4 = inlined_call_operand.vmem [shape: f32[2,32,64], index: 4, kind: input, shape index: {}]   ;;  %s5330_s5 = inlined_call_operand.vmem [shape: f32[2,64,32], index: 5, kind: input, shape index: {}]   ;;  %s5331_s6 = inlined_call_operand.hbm [shape: f32[2,10,16,96], index: 6, kind: input, shape index: {}]   ;;  %s5332_s7 = inlined_call_operand.hbm [shape: f32[16,32], index: 7, kind: output, shape index: {}]  }
   0x1   :  { %13 = vsyncpa [#allocation6], 0 }
   0x2   :  { %14 = vsyncpa [#allocation4], 0  ;;  %s4683_s24 = smov [#allocation5]   ;;  %s4684_s26 = smov [#allocation2]  }
   0x3   :  { %s32_s25 = sshll.u32 %s4683_s24, 4  ;;  %s20_s27 = sshll.u32 %s4684_s26, 4  ;;  %s33_s25 = int_to_ptr.vmem [resolvable:$true] %s32_s25  ;;  %s4744_s27 = int_to_ptr.vmem [resolvable:$true] %s20_s27 }
   0x4   :  { %s4589_s30 = scalar_lea.hbm %s5326_s1, 512 }
   0x5   :  { %p4590_p0 = scmp.ne.s32.totalorder %s5326_s1, %s4589_s30  ;;  %p4593_p1 = scmp.lt.u32.totalorder %s4589_s30, %s5326_s1 }
   0x7   :  { %p4595_p2 = pnand %p4593_p1, %p4590_p0 }
   0x9   :  { %4598 = shalt.err (!%p4595_p2)
}
   0xa   :  { %s4599_s12 = scalar_lea.vmem %s33_s25, 512  ;;  %p4604_p4 = scmp.lt.s32.totalorder %s33_s25, %s33_s25 }
   0xb   :  { %p4600_p3 = scmp.ne.s32.totalorder %s33_s25, %s4599_s12  ;;  %p4605_p5 = scmp.lt.s32.totalorder %s4599_s12, %s4599_s12 }
   0xd   :  { %p4606_p6 = por %p4605_p5, %p4604_p4 }
   0xf   :  { %p4607_p7 = pnand %p4606_p6, %p4600_p3 }
  0x11   :  { %4610 = shalt.err (!%p4607_p7)
}
  0x12   :  { %s4685_s13 = smov 128   ;;  %s4686_s14 = smov 8  }
  0x13   :  { %38 = dma.hbm_to_vmem [thread:$0]  %s5326_s1, 512, %s33_s25, [#allocation6], %s4685_s13, %s4685_s13, %s4686_s14  }
  0x14   :  { %s4611_s19 = scalar_lea.hbm %s5325_s0, 256 }
  0x15   :  { %p4612_p8 = scmp.ne.s32.totalorder %s5325_s0, %s4611_s19  ;;  %p4615_p9 = scmp.lt.u32.totalorder %s4611_s19, %s5325_s0 }
  0x17   :  { %p4617_p10 = pnand %p4615_p9, %p4612_p8 }
  0x19   :  { %4620 = shalt.err (!%p4617_p10)
}
  0x1a   :  { %s4621_s24 = scalar_lea.vmem %s4744_s27, 256  ;;  %p4626_p12 = scmp.lt.s32.totalorder %s4744_s27, %s4744_s27 }
  0x1b   :  { %p4622_p11 = scmp.ne.s32.totalorder %s4744_s27, %s4621_s24  ;;  %p4627_p13 = scmp.lt.s32.totalorder %s4621_s24, %s4621_s24 }
  0x1d   :  { %p4628_p0 = por %p4627_p13, %p4626_p12 }
  0x1f   :  { %p4629_p1 = pnand %p4628_p0, %p4622_p11 }
  0x21   :  { %4632 = shalt.err (!%p4629_p1)
}
  0x22   :  { %26 = dma.hbm_to_vmem [thread:$0]  %s5325_s0, 256, %s4744_s27, [#allocation3], %s4685_s13, %s4685_s13, %s4686_s14  }
  0x23   :  { %s4687_s26 = smov [#allocation7]   ;;  %s4633_s8 = scalar_lea.hbm %s5331_s6, 5120 }
  0x24   :  { %s52_s28 = sshll.u32 %s4687_s26, 4  ;;  %p4634_p2 = scmp.ne.s32.totalorder %s5331_s6, %s4633_s8  ;;  %s53_s28 = int_to_ptr.vmem [resolvable:$true] %s52_s28 }
  0x25   :  { %p4637_p3 = scmp.lt.u32.totalorder %s4633_s8, %s5331_s6 }
  0x27   :  { %p4639_p4 = pnand %p4637_p3, %p4634_p2 }
  0x29   :  { %4642 = shalt.err (!%p4639_p4)
}
  0x2a   :  { %s4643_s15 = scalar_lea.vmem %s53_s28, 5120  ;;  %p4648_p6 = scmp.lt.s32.totalorder %s53_s28, %s53_s28 }
  0x2b   :  { %p4644_p5 = scmp.ne.s32.totalorder %s53_s28, %s4643_s15  ;;  %p4649_p7 = scmp.lt.s32.totalorder %s4643_s15, %s4643_s15 }
  0x2d   :  { %p4650_p8 = por %p4649_p7, %p4648_p6 }
  0x2f   :  { %p4651_p9 = pnand %p4650_p8, %p4644_p5 }
  0x31   :  { %4654 = shalt.err (!%p4651_p9)
}
  0x32   :  { %58 = dma.hbm_to_vmem [thread:$0]  %s5331_s6, 5120, %s53_s28, [#allocation6], %s4685_s13, %s4685_s13, %s4686_s14  }
  0x33   :  { %4677 = dma.done.wait [#allocation3], 256  }
  0x34   :  { %4678 = vsyncadd [#allocation3], 4294967040 }
  0x35   :  { %4679 = dma.done.wait [#allocation6], 5632  }
  0x36   :  { %4680 = vsyncadd [#allocation6], 4294961664  ;;  %vm72_vm0 = vcmask 130048   ;;  %v70_v0 = vld [vmem:[#allocation2] sm:$0xff]  ;;  %v71_v1 = vld [vmem:[#allocation2 + $0x8] sm:$0xff]  ;;  %vm197_vm1 = vcmask 261120  }
  0x37   :  { %v68_v2 = vld [vmem:[#allocation5] sm:$0xff]  ;;  %v4396_v3 = vpack.c.bf16 %v71_v1, %v70_v0  ;;  %v154_v4 = vld [vmem:[%s5327_s2] sm:$0xff]  ;;  %v155_v5 = vld [vmem:[%s5327_s2 + $0x8] sm:$0xff]  ;;  %v4688_v13 = vmov 0.0   ;;  %vm4689_vm2 = vmmov 0   ;;  %s4690_s23 = smov 96  }
  0x38   :  { %4122 = vmatprep.mubr.msk.f32.mxu0 %vm72_vm0, %v68_v2  ;;  %v4400_v6 = vpack.c.bf16 %v155_v5, %v154_v4  ;;  %v156_v7 = vld [vmem:[%s5327_s2 + $0x10] sm:$0xff]  ;;  %v157_v8 = vld [vmem:[%s5327_s2 + $0x18] sm:$0xff]  ;;  %vm282_vm3 = vcmask 64512   ;;  %s4691_s24 = smov 64   ;;  %s4692_s1 = smov 88   ;;  %vm1634_vm4 = vcmask 195584  }
  0x39   :  { %4397 = vmatprep.subr.bf16.mxu0 %v4396_v3  ;;  %v4404_v9 = vpack.c.bf16 %v157_v8, %v156_v7  ;;  %v69_v10 = vld [vmem:[#allocation5 + $0x8] sm:$0xff]  ;;  %v174_v14 = vld [vmem:[#allocation7] sm:$0xff]  ;;  %s4693_s25 = smov 120   ;;  %s4694_s26 = smov 56   ;;  %vm1838_vm5 = vcmask 523264  }
  0x3a   :  { %4399 = vmatpush3.bf16.msra.mxu0 %v4396_v3  ;;  %4401 = vmatprep.subr.bf16.mxu1 %v4400_v6  ;;  %v175_v18 = vld [vmem:[#allocation7 + $0x8] sm:$0xff]  ;;  %s4695_s28 = smov 112   ;;  %s4696_s29 = smov 80  }
  0x3b   :  { %4403 = vmatpush3.bf16.msra.mxu1 %v4400_v6  ;;  %4136 = vmatprep.subr.mxu0 %v4688_v13  ;;  %s4697_s30 = smov 48   ;;  %s4698_s8 = smov 72  }
  0x3c   :  { %4405 = vmatprep.subr.bf16.mxu1 %v4404_v9  ;;  %s4699_s9 = smov 104   ;;  %s4700_s10 = smov 40  }
  0x3d   :  { %4123 = vmatmul.mubr.msk.f32.vlgmr.msra.gmra.mrb[0].mxu0 %vm72_vm0, %v69_v10  ;;  %s4701_s11 = smov 16   ;;  %s4702_s6 = smov 24  }
  0x3e   :  { %4138 = vmatprep.mubr.msk.f32.mxu0 %vm4689_vm2, %v4688_v13 }
  0x3f   :  { %4407 = vmatpush3.bf16.msra.mxu1 %v4404_v9 }
  0x40   :  { %4156 = vmatprep.subr.mxu1 %v4688_v13 }
 0x110   :  { %v4810_v11 = vpop.f32.mrb[0].mxu0 }
 0x111   :  { %v4812_v12 = vpop.f32.mrb[1].mxu0 }
 0x112   :  { %4133 = vmatprep.mubr.msk.f32.mxu1 %vm197_vm1, %v4812_v12 }
 0x113   :  { %4134 = vmatmul.mubr.msk.f32.vlgmr.msra.gmra.mrb[0].mxu1 %vm197_vm1, %v4810_v11 }
 0x114   :  { %4158 = vmatprep.mubr.msk.f32.mxu1 %vm4689_vm2, %v4688_v13 }
 0x1e6   :  { %v4135_v15 = vpop.f32.mrb[0].mxu1 }
 0x1e7   :  { %v270_v16 = vpop.f32.mrb[1].mxu1  ;;  %v4828_v19 = vadd.f32 %v4135_v15, %v175_v18 }
 0x1e8   :  { %v4824_v17 = vadd.f32 %v270_v16, %v174_v14 }
 0x1ea   :  { %280 = vrot.lane.b32.xlu0 %v4824_v17, %s4690_s23 }
 0x1ee   :  { %358 = vrot.lane.b32.xlu0 %v4828_v19, %s4690_s23 }
 0x25c   :  { %v281_v20 = vpop.permute.xlu0 %280 }
 0x25d   :  { %4137 = vmatpush3.xpose.msk.msra.mxu0 %vm282_vm3, %v281_v20 }
 0x25e   :  { %4141 = vmatprep.subr.mxu0 %v4688_v13 }
 0x260   :  { %4139 = vmatmul.mubr.msk.f32.vlgmr.msra.gmra.mrb[2].mxu0 %vm282_vm3, %v4824_v17  ;;  %v359_v21 = vpop.permute.xlu0 %358 }
 0x261   :  { %4142 = vmatpush3.xpose.msk.msra.mxu0 %vm282_vm3, %v359_v21  ;;  %4143 = vmatprep.mubr.msk.f32.mxu0 %vm4689_vm2, %v4688_v13 }
 0x262   :  { %4146 = vmatprep.subr.mxu0 %v4688_v13 }
 0x264   :  { %4144 = vmatmul.mubr.msk.f32.vlgmr.msra.gmra.mrb[4].mxu0 %vm282_vm3, %v4828_v19 }
 0x265   :  { %4148 = vmatprep.mubr.msk.f32.mxu0 %vm4689_vm2, %v4688_v13 }
 0x333   :  { %v353_v22 = vpop.f32.mrb[2].mxu0 }
 0x334   :  { %v434_v23 = vmul.f32 0.35355338, %v353_v22  ;;  %v4140_v24 = vpop.f32.mrb[3].mxu0 }
 0x336   :  { %v436_v25 = vsel %vm282_vm3, %v434_v23, -inf }
 0x337   :  { %437 = vmax.xlane.f32.xlu1 %v436_v25  ;;  %v430_v26 = vpop.f32.mrb[4].mxu0 }
 0x338   :  { %v435_v27 = vmul.f32 0.35355338, %v430_v26  ;;  %v4145_v28 = vpop.f32.mrb[5].mxu0 }
 0x33a   :  { %v439_v29 = vsel %vm282_vm3, %v435_v27, -inf }
 0x33b   :  { %440 = vmax.xlane.f32.xlu1 %v439_v29 }
 0x34c   :  { %458 = vrot.lane.b32.xlu1 %v4824_v17, %s4691_s24 }
 0x350   :  { %534 = vrot.lane.b32.xlu1 %v4828_v19, %s4691_s24 }
 0x354   :  { %612 = vrot.lane.b32.xlu1 %v4824_v17, %s4692_s1 }
 0x358   :  { %690 = vrot.lane.b32.xlu1 %v4828_v19, %s4692_s1 }
 0x3c4   :  { %v438_v30 = vpop.xlane.xlu1 %437 }
 0x3c5   :  { %v442_v31 = vsub.f32 %v434_v23, %v438_v30 }
 0x3c7   :  { %v444_v32 = vmul.f32 1.442695, %v442_v31 }
 0x3c8   :  { %v441_v33 = vpop.xlane.xlu1 %440 }
 0x3c9   :  { %4505 = vpow2.f32 %v444_v32  ;;  %v443_v34 = vsub.f32 %v435_v27, %v441_v33 }
 0x3cb   :  { %v446_v35 = vmul.f32 1.442695, %v443_v34 }
 0x3cc   :  { %v459_v36 = vpop.permute.xlu1 %458 }
 0x3cd   :  { %4507 = vpow2.f32 %v446_v35  ;;  %4147 = vmatpush3.msra.mxu0 %v459_v36 }
 0x3ce   :  { %4151 = vmatprep.subr.mxu0 %v4688_v13 }
 0x3d0   :  { %v535_v37 = vpop.permute.xlu1 %534 }
 0x3d3   :  { %v4506_v38 = vpop.eup %4505 }
 0x3d4   :  { %v613_v39 = vpop.permute.xlu1 %612  ;;  %v448_v40 = vsel %vm282_vm3, %v4506_v38, 0.0 }
 0x3d5   :  { %449 = vadd.xlane.f32.xlu0 %v448_v40  ;;  %4157 = vmatpush3.xpose.msk.msra.mxu1 %vm282_vm3, %v613_v39 }
 0x3d6   :  { %4166 = vmatprep.subr.mxu1 %v4688_v13 }
 0x3d7   :  { %v4508_v41 = vpop.eup %4507 }
 0x3d8   :  { %v451_v42 = vsel %vm282_vm3, %v4508_v41, 0.0  ;;  %v691_v43 = vpop.permute.xlu1 %690 }
 0x3d9   :  { %452 = vadd.xlane.f32.xlu1 %v451_v42 }
 0x3ea   :  { %688 = vrot.lane.b32.xlu1 %v4828_v19, %s4693_s25 }
 0x3eb   :  { %610 = vrot.lane.b32.xlu0 %v4824_v17, %s4693_s25 }
 0x462   :  { %v450_v44 = vpop.xlane.xlu0 %449 }
 0x463   :  { %4509 = vrcp.f32 %v450_v44 }
 0x466   :  { %v453_v45 = vpop.xlane.xlu1 %452  ;;  %v611_v46 = vpop.permute.xlu0 %610 }
 0x467   :  { %4511 = vrcp.f32 %v453_v45  ;;  %4159 = vmatmul.mubr.msk.f32.vlgmr.msra.gmra.mrb[2].mxu1 %vm282_vm3, %v611_v46 }
 0x468   :  { %4168 = vmatprep.mubr.msk.f32.mxu1 %vm4689_vm2, %v4688_v13 }
 0x46a   :  { %v689_v51 = vpop.permute.xlu1 %688 }
 0x46d   :  { %v4510_v47 = vpop.eup %4509 }
 0x46e   :  { %v456_v48 = vmul.f32 %v4510_v47, %v4506_v38 }
 0x470   :  { %4149 = vmatmul.mubr.msk.f32.vlgmr.msra.gmra.mrb[6].mxu0 %vm282_vm3, %v456_v48 }
 0x471   :  { %v4512_v49 = vpop.eup %4511  ;;  %4152 = vmatpush3.msra.mxu0 %v535_v37  ;;  %4153 = vmatprep.mubr.msk.f32.mxu0 %vm4689_vm2, %v4688_v13 }
 0x472   :  { %v457_v50 = vmul.f32 %v4512_v49, %v4508_v41  ;;  %4161 = vmatprep.subr.mxu0 %v4688_v13 }
 0x474   :  { %4154 = vmatmul.mubr.msk.f32.vlgmr.msra.gmra.mrb[8].mxu0 %vm282_vm3, %v457_v50 }
 0x475   :  { %4163 = vmatprep.mubr.msk.f32.mxu0 %vm4689_vm2, %v4688_v13 }
 0x478   :  { %4162 = vmatpush3.xpose.msk.msra.mxu0 %vm282_vm3, %v691_v43 }
 0x479   :  { %4171 = vmatprep.subr.mxu0 %v4688_v13 }
 0x47b   :  { %4164 = vmatmul.mubr.msk.f32.vlgmr.msra.gmra.mrb[10].mxu0 %vm282_vm3, %v689_v51 }
 0x47c   :  { %4173 = vmatprep.mubr.msk.f32.mxu0 %vm4689_vm2, %v4688_v13 }
 0x53a   :  { %v684_v52 = vpop.f32.mrb[2].mxu1 }
 0x53b   :  { %v766_v53 = vmul.f32 0.35355338, %v684_v52  ;;  %v4160_v54 = vpop.f32.mrb[3].mxu1 }
 0x53d   :  { %v768_v55 = vsel %vm282_vm3, %v766_v53, -inf }
 0x53e   :  { %769 = vmax.xlane.f32.xlu1 %v768_v55 }
 0x543   :  { %v4879_v56 = vpop.f32.mrb[6].mxu0 }
 0x544   :  { %v4150_v57 = vpop.f32.mrb[7].mxu0 }
 0x547   :  { %v4881_v58 = vpop.f32.mrb[8].mxu0 }
 0x548   :  { %v4155_v59 = vpop.f32.mrb[9].mxu0 }
 0x54e   :  { %v762_v60 = vpop.f32.mrb[10].mxu0 }
 0x54f   :  { %v767_v61 = vmul.f32 0.35355338, %v762_v60  ;;  %v4165_v62 = vpop.f32.mrb[11].mxu0 }
 0x551   :  { %v771_v63 = vsel %vm282_vm3, %v767_v61, -inf }
 0x552   :  { %772 = vmax.xlane.f32.xlu0 %v771_v63 }
 0x568   :  { %866 = vrot.lane.b32.xlu0 %v4828_v19, %s4694_s26 }
 0x56c   :  { %942 = vrot.lane.b32.xlu0 %v4824_v17, %s4695_s28 }
 0x5cb   :  { %v770_v0 = vpop.xlane.xlu1 %769 }
 0x5cc   :  { %v774_v1 = vsub.f32 %v766_v53, %v770_v0 }
 0x5ce   :  { %v776_v2 = vmul.f32 1.442695, %v774_v1 }
 0x5d0   :  { %4513 = vpow2.f32 %v776_v2 }
 0x5da   :  { %v4514_v3 = vpop.eup %4513 }
 0x5db   :  { %v780_v4 = vsel %vm282_vm3, %v4514_v3, 0.0 }
 0x5dc   :  { %781 = vadd.xlane.f32.xlu1 %v780_v4 }
 0x5df   :  { %v773_v5 = vpop.xlane.xlu0 %772 }
 0x5e0   :  { %v775_v7 = vsub.f32 %v767_v61, %v773_v5 }
 0x5e2   :  { %v778_v8 = vmul.f32 1.442695, %v775_v7 }
 0x5e3   :  { %v867_v6 = vpop.permute.xlu0 %866 }
 0x5e4   :  { %4172 = vmatpush3.msra.mxu0 %v867_v6  ;;  %4515 = vpow2.f32 %v778_v8 }
 0x5e5   :  { %4181 = vmatprep.subr.mxu0 %v4688_v13 }
 0x5e7   :  { %v943_v21 = vpop.permute.xlu0 %942 }
 0x5ed   :  { %790 = vrot.lane.b32.xlu1 %v4824_v17, %s4694_s26 }
 0x5ee   :  { %v4516_v9 = vpop.eup %4515 }
 0x5ef   :  { %v783_v10 = vsel %vm282_vm3, %v4516_v9, 0.0 }
 0x5f1   :  { %944 = vrot.lane.b32.xlu1 %v4824_v17, %s4696_s29 }
 0x5f5   :  { %1022 = vrot.lane.b32.xlu1 %v4828_v19, %s4696_s29 }
 0x619   :  { %784 = vadd.xlane.f32.xlu1 %v783_v10 }
 0x62a   :  { %1020 = vrot.lane.b32.xlu1 %v4828_v19, %s4695_s28 }
 0x669   :  { %v782_v14 = vpop.xlane.xlu1 %781 }
 0x66a   :  { %4517 = vrcp.f32 %v782_v14 }
 0x66d   :  { %v791_v15 = vpop.permute.xlu1 %790 }
 0x66e   :  { %4167 = vmatpush3.msra.mxu1 %v791_v15 }
 0x66f   :  { %4176 = vmatprep.subr.mxu1 %v4688_v13 }
 0x671   :  { %v945_v20 = vpop.permute.xlu1 %944 }
 0x674   :  { %v4518_v16 = vpop.eup %4517 }
 0x675   :  { %v788_v18 = vmul.f32 %v4518_v16, %v4514_v3  ;;  %v1023_v22 = vpop.permute.xlu1 %1022 }
 0x677   :  { %4169 = vmatmul.mubr.msk.f32.vlgmr.msra.gmra.mrb[4].mxu1 %vm282_vm3, %v788_v18 }
 0x678   :  { %4177 = vmatpush3.xpose.msk.msra.mxu1 %vm282_vm3, %v945_v20  ;;  %4178 = vmatprep.mubr.msk.f32.mxu1 %vm4689_vm2, %v4688_v13 }
 0x679   :  { %4186 = vmatprep.subr.mxu1 %v4688_v13 }
 0x67b   :  { %4179 = vmatmul.mubr.msk.f32.vlgmr.msra.gmra.mrb[6].mxu1 %vm282_vm3, %v943_v21 }
 0x67c   :  { %4188 = vmatprep.mubr.msk.f32.mxu1 %vm4689_vm2, %v4688_v13 }
 0x6a6   :  { %v785_v23 = vpop.xlane.xlu1 %784 }
 0x6a7   :  { %4519 = vrcp.f32 %v785_v23 }
 0x6aa   :  { %v1021_v26 = vpop.permute.xlu1 %1020 }
 0x6b1   :  { %v4520_v24 = vpop.eup %4519 }
 0x6b2   :  { %v789_v25 = vmul.f32 %v4520_v24, %v4516_v9 }
 0x6b4   :  { %4174 = vmatmul.mubr.msk.f32.vlgmr.msra.gmra.mrb[12].mxu0 %vm282_vm3, %v789_v25 }
 0x6b5   :  { %4182 = vmatpush3.xpose.msk.msra.mxu0 %vm282_vm3, %v1023_v22  ;;  %4183 = vmatprep.mubr.msk.f32.mxu0 %vm4689_vm2, %v4688_v13 }
 0x6b6   :  { %4191 = vmatprep.subr.mxu0 %v4688_v13 }
 0x6b8   :  { %4184 = vmatmul.mubr.msk.f32.vlgmr.msra.gmra.mrb[14].mxu0 %vm282_vm3, %v1021_v26 }
 0x6b9   :  { %4193 = vmatprep.mubr.msk.f32.mxu0 %vm4689_vm2, %v4688_v13 }
 0x74a   :  { %v4916_v27 = vpop.f32.mrb[4].mxu1 }
 0x74b   :  { %v4170_v28 = vpop.f32.mrb[5].mxu1 }
 0x74e   :  { %v1016_v29 = vpop.f32.mrb[6].mxu1 }
 0x74f   :  { %v1098_v30 = vmul.f32 0.35355338, %v1016_v29  ;;  %v4180_v31 = vpop.f32.mrb[7].mxu1 }
 0x751   :  { %v1100_v32 = vsel %vm282_vm3, %v1098_v30, -inf }
 0x752   :  { %1101 = vmax.xlane.f32.xlu0 %v1100_v32 }
 0x787   :  { %v4919_v33 = vpop.f32.mrb[12].mxu0 }
 0x788   :  { %v4175_v34 = vpop.f32.mrb[13].mxu0 }
 0x789   :  { %v160_v34 = vld [vmem:[%s5328_s3 + $0x10] sm:$0xff] }
 0x78b   :  { %v1094_v35 = vpop.f32.mrb[14].mxu0 }
 0x78c   :  { %v1099_v36 = vmul.f32 0.35355338, %v1094_v35  ;;  %v4185_v37 = vpop.f32.mrb[15].mxu0 }
 0x78e   :  { %v1103_v38 = vsel %vm282_vm3, %v1099_v36, -inf }
 0x78f   :  { %1104 = vmax.xlane.f32.xlu1 %v1103_v38 }
 0x7a0   :  { %1122 = vrot.lane.b32.xlu1 %v4824_v17, %s4697_s30 }
 0x7a4   :  { %1276 = vrot.lane.b32.xlu1 %v4824_v17, %s4698_s8 }
 0x7a8   :  { %1354 = vrot.lane.b32.xlu1 %v4828_v19, %s4698_s8 }
 0x7ac   :  { %1352 = vrot.lane.b32.xlu1 %v4828_v19, %s4699_s9 }
 0x7df   :  { %v1102_v39 = vpop.xlane.xlu0 %1101 }
 0x7e0   :  { %v1106_v40 = vsub.f32 %v1098_v30, %v1102_v39 }
 0x7e2   :  { %v1108_v41 = vmul.f32 1.442695, %v1106_v40 }
 0x7e4   :  { %4521 = vpow2.f32 %v1108_v41 }
 0x7ee   :  { %v4522_v42 = vpop.eup %4521 }
 0x7ef   :  { %v1112_v43 = vsel %vm282_vm3, %v4522_v42, 0.0 }
 0x7f0   :  { %1113 = vadd.xlane.f32.xlu0 %v1112_v43 }
 0x806   :  { %1198 = vrot.lane.b32.xlu0 %v4828_v19, %s4697_s30 }
 0x81c   :  { %v1105_v44 = vpop.xlane.xlu1 %1104 }
 0x81d   :  { %v1107_v45 = vsub.f32 %v1099_v36, %v1105_v44  ;;  %v161_v36 = vld [vmem:[%s5328_s3 + $0x18] sm:$0xff] }
 0x81e   :  { %v4412_v37 = vpack.c.bf16 %v161_v36, %v160_v34  ;;  %v186_v36 = vld [vmem:[#allocation7 + $0x40] sm:$0xff] }
 0x81f   :  { %v1110_v46 = vmul.f32 1.442695, %v1107_v45 }
 0x820   :  { %v1123_v47 = vpop.permute.xlu1 %1122 }
 0x821   :  { %4523 = vpow2.f32 %v1110_v46  ;;  %4187 = vmatpush3.msra.mxu1 %v1123_v47 }
 0x822   :  { %4196 = vmatprep.subr.mxu1 %v4688_v13 }
 0x824   :  { %v1277_v54 = vpop.permute.xlu1 %1276 }
 0x828   :  { %v1355_v60 = vpop.permute.xlu1 %1354 }
 0x82b   :  { %v4524_v48 = vpop.eup %4523 }
 0x82c   :  { %v1115_v49 = vsel %vm282_vm3, %v4524_v48, 0.0  ;;  %v1353_v62 = vpop.permute.xlu1 %1352 }
 0x82d   :  { %1116 = vadd.xlane.f32.xlu0 %v1115_v49 }
 0x843   :  { %1274 = vrot.lane.b32.xlu0 %v4824_v17, %s4699_s9 }
 0x87d   :  { %v1114_v50 = vpop.xlane.xlu0 %1113 }
 0x87e   :  { %4525 = vrcp.f32 %v1114_v50 }
 0x881   :  { %v1199_v51 = vpop.permute.xlu0 %1198 }
 0x882   :  { %4192 = vmatpush3.msra.mxu0 %v1199_v51 }
 0x883   :  { %4201 = vmatprep.subr.mxu0 %v4688_v13 }
 0x888   :  { %v4526_v52 = vpop.eup %4525 }
 0x889   :  { %v1120_v53 = vmul.f32 %v4526_v52, %v4522_v42 }
 0x88b   :  { %4189 = vmatmul.mubr.msk.f32.vlgmr.msra.gmra.mrb[8].mxu1 %vm282_vm3, %v1120_v53 }
 0x88c   :  { %4197 = vmatpush3.xpose.msk.msra.mxu1 %vm282_vm3, %v1277_v54  ;;  %4198 = vmatprep.mubr.msk.f32.mxu1 %vm4689_vm2, %v4688_v13  ;;  %v177_v54 = vld [vmem:[#allocation7 + $0x10] sm:$0xff] }
 0x88d   :  { %4206 = vmatprep.subr.mxu1 %v4688_v13 }
 0x8ba   :  { %v1117_v55 = vpop.xlane.xlu0 %1116 }
 0x8bb   :  { %4527 = vrcp.f32 %v1117_v55 }
 0x8be   :  { %v1275_v57 = vpop.permute.xlu0 %1274 }
 0x8bf   :  { %4199 = vmatmul.mubr.msk.f32.vlgmr.msra.gmra.mrb[10].mxu1 %vm282_vm3, %v1275_v57 }
 0x8c0   :  { %4208 = vmatprep.mubr.msk.f32.mxu1 %vm4689_vm2, %v4688_v13 }
 0x8c5   :  { %v4528_v59 = vpop.eup %4527 }
 0x8c6   :  { %v1121_v61 = vmul.f32 %v4528_v59, %v4524_v48 }
 0x8c8   :  { %4194 = vmatmul.mubr.msk.f32.vlgmr.msra.gmra.mrb[16].mxu0 %vm282_vm3, %v1121_v61 }
 0x8c9   :  { %4202 = vmatpush3.xpose.msk.msra.mxu0 %vm282_vm3, %v1355_v60  ;;  %4203 = vmatprep.mubr.msk.f32.mxu0 %vm4689_vm2, %v4688_v13 }
 0x8ca   :  { %4211 = vmatprep.subr.mxu0 %v4688_v13 }
 0x8cc   :  { %4204 = vmatmul.mubr.msk.f32.vlgmr.msra.gmra.mrb[18].mxu0 %vm282_vm3, %v1353_v62 }
 0x8cd   :  { %4213 = vmatprep.mubr.msk.f32.mxu0 %vm4689_vm2, %v4688_v13 }
 0x95e   :  { %v1194_v63 = vpop.f32.mrb[8].mxu1 }
 0x95f   :  { %v4190_v0 = vpop.f32.mrb[9].mxu1 }
 0x992   :  { %v1348_v1 = vpop.f32.mrb[10].mxu1 }
 0x993   :  { %v1430_v2 = vmul.f32 0.35355338, %v1348_v1  ;;  %v4200_v3 = vpop.f32.mrb[11].mxu1 }
 0x995   :  { %v1432_v4 = vsel %vm282_vm3, %v1430_v2, -inf }
 0x996   :  { %1433 = vmax.xlane.f32.xlu0 %v1432_v4 }
 0x99b   :  { %v1270_v5 = vpop.f32.mrb[16].mxu0 }
 0x99c   :  { %v4195_v6 = vpop.f32.mrb[17].mxu0 }
 0x99d   :  { %v165_v6 = vld [vmem:[%s5329_s4 + $0x18] sm:$0xff] }
 0x99f   :  { %v1426_v7 = vpop.f32.mrb[18].mxu0 }
 0x9a0   :  { %v1431_v8 = vmul.f32 0.35355338, %v1426_v7  ;;  %v4205_v9 = vpop.f32.mrb[19].mxu0 }
 0x9a1   :  { %v167_v9 = vld [vmem:[%s5330_s5 + $0x8] sm:$0xff] }
 0x9a2   :  { %v1435_v10 = vsel %vm282_vm3, %v1431_v8, -inf }
 0x9a3   :  { %1436 = vmax.xlane.f32.xlu1 %v1435_v10  ;;  %v168_v10 = vld [vmem:[%s5330_s5 + $0x10] sm:$0xff] }
 0x9b4   :  { %1454 = vrot.lane.b32.xlu1 %v4824_v17, %s4700_s10 }
 0x9b8   :  { %1608 = vrot.lane.b32.xlu1 %v4916_v27, %s4686_s14 }
 0x9bc   :  { %1610 = vrot.lane.b32.xlu1 %v4919_v33, %s4686_s14  ;;  %v159_v33 = vld [vmem:[%s5328_s3 + $0x8] sm:$0xff] }
 0x9c0   :  { %1618 = vrot.lane.b32.xlu1 %v1270_v5, %s4701_s11  ;;  %v164_v5 = vld [vmem:[%s5329_s4 + $0x10] sm:$0xff] }
 0x9c1   :  { %v4420_v7 = vpack.c.bf16 %v165_v6, %v164_v5 }
 0xa23   :  { %v1434_v14 = vpop.xlane.xlu0 %1433 }
 0xa24   :  { %v1438_v15 = vsub.f32 %v1430_v2, %v1434_v14 }
 0xa26   :  { %v1440_v16 = vmul.f32 1.442695, %v1438_v15  ;;  %v169_v15 = vld [vmem:[%s5330_s5 + $0x18] sm:$0xff] }
 0xa28   :  { %4529 = vpow2.f32 %v1440_v16  ;;  %v4428_v16 = vpack.c.bf16 %v169_v15, %v168_v10  ;;  %v3938_v10 = vld [vmem:[%s5327_s2 + $0x30] sm:$0xff] }
 0xa30   :  { %v1437_v18 = vpop.xlane.xlu1 %1436 }
 0xa31   :  { %v1439_v20 = vsub.f32 %v1431_v8, %v1437_v18  ;;  %v166_v8 = vld [vmem:[%s5330_s5] sm:$0xff] }
 0xa32   :  { %v4530_v21 = vpop.eup %4529  ;;  %v4424_v14 = vpack.c.bf16 %v167_v9, %v166_v8  ;;  %v170_v18 = vld [vmem:[%s5330_s5 + $0x20] sm:$0xff]  ;;  %v3937_v8 = vld [vmem:[%s5327_s2 + $0x28] sm:$0xff] }
 0xa33   :  { %v1442_v22 = vmul.f32 1.442695, %v1439_v20  ;;  %v1444_v23 = vsel %vm282_vm3, %v4530_v21, 0.0  ;;  %v171_v20 = vld [vmem:[%s5330_s5 + $0x28] sm:$0xff] }
 0xa34   :  { %v1455_v17 = vpop.permute.xlu1 %1454  ;;  %1445 = vadd.xlane.f32.xlu0 %v1444_v23 }
 0xa35   :  { %4531 = vpow2.f32 %v1442_v22  ;;  %4207 = vmatpush3.msra.mxu1 %v1455_v17 }
 0xa38   :  { %v1609_v42 = vpop.permute.xlu1 %1608 }
 0xa39   :  { %v1630_v44 = vsel %vm282_vm3, %v4879_v56, %v1609_v42  ;;  %v178_v56 = vld [vmem:[#allocation7 + $0x18] sm:$0xff]  ;;  %v187_v42 = vld [vmem:[#allocation7 + $0x48] sm:$0xff] }
 0xa3c   :  { %v1611_v48 = vpop.permute.xlu1 %1610 }
 0xa3d   :  { %v1631_v50 = vsel %vm282_vm3, %v4881_v58, %v1611_v48  ;;  %v172_v48 = vld [vmem:[%s5330_s5 + $0x30] sm:$0xff] }
 0xa3f   :  { %v4532_v24 = vpop.eup %4531 }
 0xa40   :  { %v1447_v25 = vsel %vm282_vm3, %v4532_v24, 0.0  ;;  %v1619_v49 = vpop.permute.xlu1 %1618 }
 0xa41   :  { %1448 = vadd.xlane.f32.xlu0 %v1447_v25  ;;  %v1633_v51 = vsel %vm72_vm0, %v1631_v50, %v1619_v49  ;;  %v173_v49 = vld [vmem:[%s5330_s5 + $0x38] sm:$0xff] }
 0xa42   :  { %v4436_v50 = vpack.c.bf16 %v173_v49, %v172_v48 }
 0xa57   :  { %1530 = vrot.lane.b32.xlu0 %v4828_v19, %s4700_s10  ;;  %v158_v19 = vld [vmem:[%s5328_s3] sm:$0xff] }
 0xa58   :  { %v4408_v35 = vpack.c.bf16 %v159_v33, %v158_v19 }
 0xa5a   :  { %4409 = vmatprep.subr.bf16.mxu1 %v4408_v35 }
 0xa5b   :  { %1616 = vrot.lane.b32.xlu0 %v1194_v63, %s4701_s11 }
 0xac1   :  { %v1446_v26 = vpop.xlane.xlu0 %1445 }
 0xac2   :  { %4533 = vrcp.f32 %v1446_v26 }
 0xacc   :  { %v4534_v27 = vpop.eup %4533 }
 0xacd   :  { %v1452_v28 = vmul.f32 %v4534_v27, %v4530_v21  ;;  %v4432_v21 = vpack.c.bf16 %v171_v20, %v170_v18 }
 0xace   :  { %v1449_v29 = vpop.xlane.xlu0 %1448 }
 0xacf   :  { %4535 = vrcp.f32 %v1449_v29  ;;  %4209 = vmatmul.mubr.msk.f32.vlgmr.msra.gmra.mrb[12].mxu1 %vm282_vm3, %v1452_v28 }
 0xad0   :  { %4411 = vmatpush3.bf16.msra.mxu1 %v4408_v35 }
 0xad1   :  { %4413 = vmatprep.subr.bf16.mxu1 %v4412_v37 }
 0xad2   :  { %v1531_v30 = vpop.permute.xlu0 %1530 }
 0xad3   :  { %4212 = vmatpush3.msra.mxu0 %v1531_v30 }
 0xad4   :  { %4415 = vmatpush3.bf16.msra.mxu1 %v4412_v37 }
 0xad5   :  { %4425 = vmatprep.subr.bf16.mxu1 %v4424_v14 }
 0xad6   :  { %v1617_v43 = vpop.permute.xlu0 %1616 }
 0xad7   :  { %v1632_v45 = vsel %vm72_vm0, %v1630_v44, %v1617_v43 }
 0xad9   :  { %v4536_v31 = vpop.eup %4535 }
 0xada   :  { %v1453_v32 = vmul.f32 %v4536_v31, %v4532_v24 }
 0xadc   :  { %4214 = vmatmul.mubr.msk.f32.vlgmr.msra.gmra.mrb[20].mxu0 %vm282_vm3, %v1453_v32 }
 0xba2   :  { %v1526_v38 = vpop.f32.mrb[12].mxu1 }
 0xba3   :  { %1624 = vrot.lane.b32.xlu0 %v1526_v38, %s4702_s6  ;;  %v4210_v39 = vpop.f32.mrb[13].mxu1  ;;  %v189_v38 = vld [vmem:[#allocation7 + $0x50] sm:$0xff] }
 0xbaf   :  { %v1602_v40 = vpop.f32.mrb[20].mxu0 }
 0xbb0   :  { %1626 = vrot.lane.b32.xlu1 %v1602_v40, %s4702_s6  ;;  %v4215_v41 = vpop.f32.mrb[21].mxu0 }
 0xc15   :  { %v1625_v46 = vpop.permute.xlu0 %1624 }
 0xc16   :  { %v1635_v47 = vsel %vm1634_vm4, %v1632_v45, %v1625_v46  ;;  %v190_v45 = vld [vmem:[#allocation7 + $0x58] sm:$0xff] }
 0xc17   :  { %4224 = vmatprep.mubr.msk.f32.mxu1 %vm197_vm1, %v1635_v47 }
 0xc22   :  { %v1627_v52 = vpop.permute.xlu1 %1626 }
 0xc23   :  { %v1636_v53 = vsel %vm1634_vm4, %v1633_v51, %v1627_v52  ;;  %v181_v51 = vld [vmem:[#allocation7 + $0x28] sm:$0xff]  ;;  %v180_v52 = vld [vmem:[#allocation7 + $0x20] sm:$0xff] }
 0xc24   :  { %4225 = vmatmul.mubr.msk.f32.vlgmr.msra.gmra.mrb[14].mxu1 %vm197_vm1, %v1636_v53 }
 0xc25   :  { %4427 = vmatpush3.bf16.msra.mxu1 %v4424_v14  ;;  %v3939_v14 = vld [vmem:[%s5327_s2 + $0x38] sm:$0xff] }
 0xc26   :  { %4429 = vmatprep.subr.bf16.mxu1 %v4428_v16  ;;  %v4444_v15 = vpack.c.bf16 %v3939_v14, %v3938_v10 }
 0xc29   :  { %4431 = vmatpush3.bf16.msra.mxu1 %v4428_v16 }
 0xc2a   :  { %4433 = vmatprep.subr.bf16.mxu1 %v4432_v21 }
 0xc2d   :  { %4435 = vmatpush3.bf16.msra.mxu1 %v4432_v21 }
 0xc2e   :  { %4437 = vmatprep.subr.bf16.mxu1 %v4436_v50 }
 0xc31   :  { %4439 = vmatpush3.bf16.msra.mxu1 %v4436_v50 }
 0xc32   :  { %4278 = vmatprep.subr.mxu1 %v4688_v13 }
 0xcf7   :  { %v4226_v55 = vpop.f32.mrb[14].mxu1 }
 0xcf8   :  { %v1715_v57 = vadd.f32 %v4226_v55, %v178_v56  ;;  %v1709_v59 = vpop.f32.mrb[15].mxu1 }
 0xcf9   :  { %v1710_v60 = vadd.f32 %v1709_v59, %v177_v54 }
 0xcfa   :  { %v4995_v61 = vadd.f32 %v4810_v11, %v1715_v57  ;;  %v162_v11 = vld [vmem:[%s5329_s4] sm:$0xff] }
 0xcfb   :  { %v1718_v62 = vadd.f32 %v1710_v60, %v4812_v12  ;;  %v163_v12 = vld [vmem:[%s5329_s4 + $0x8] sm:$0xff] }
 0xcfc   :  { %v1723_v58 = vsel %vm197_vm1, %v4995_v61, 0.0  ;;  %v1730_v2 = vmul.f32 %v4995_v61, %v4995_v61  ;;  %v4416_v4 = vpack.c.bf16 %v163_v12, %v162_v11  ;;  %v184_v60 = vld [vmem:[#allocation7 + $0x38] sm:$0xff] }
 0xcfd   :  { %1724 = vadd.xlane.f32.xlu1 %v1723_v58  ;;  %v1720_v63 = vsel %vm197_vm1, %v1718_v62, 0.0  ;;  %v1729_v0 = vmul.f32 %v1718_v62, %v1718_v62 }
 0xcfe   :  { %1721 = vadd.xlane.f32.xlu0 %v1720_v63  ;;  %v1734_v3 = vsel %vm197_vm1, %v1730_v2, 0.0  ;;  %4417 = vmatprep.subr.bf16.mxu0 %v4416_v4 }
 0xcff   :  { %v1731_v1 = vsel %vm197_vm1, %v1729_v0, 0.0  ;;  %4419 = vmatpush3.bf16.msra.mxu0 %v4416_v4 }
 0xd00   :  { %4421 = vmatprep.subr.bf16.mxu0 %v4420_v7 }
 0xd02   :  { %1732 = vadd.xlane.f32.xlu0 %v1731_v1 }
 0xd03   :  { %4423 = vmatpush3.bf16.msra.mxu0 %v4420_v7  ;;  %v3936_v7 = vld [vmem:[%s5327_s2 + $0x20] sm:$0xff] }
 0xd04   :  { %v4440_v9 = vpack.c.bf16 %v3937_v8, %v3936_v7 }
 0xd06   :  { %1735 = vadd.xlane.f32.xlu0 %v1734_v3  ;;  %4441 = vmatprep.subr.bf16.mxu0 %v4440_v9 }
 0xd8a   :  { %v1725_v17 = vpop.xlane.xlu1 %1724 }
 0xd8b   :  { %v1722_v22 = vpop.xlane.xlu0 %1721  ;;  %v1728_v25 = vmul.f32 0.03125, %v1725_v17 }
 0xd8c   :  { %v1727_v23 = vmul.f32 0.03125, %v1722_v22 }
 0xd8d   :  { %v1740_v30 = vmul.f32 %v1728_v25, %v1728_v25  ;;  %v1744_v39 = vsub.f32 %v4995_v61, %v1728_v25  ;;  %v183_v61 = vld [vmem:[#allocation7 + $0x30] sm:$0xff] }
 0xd8e   :  { %v1739_v26 = vmul.f32 %v1727_v23, %v1727_v23  ;;  %v1743_v34 = vsub.f32 %v1718_v62, %v1727_v23 }
 0xd8f   :  { %v1733_v24 = vpop.xlane.xlu0 %1732 }
 0xd90   :  { %v1737_v27 = vmul.f32 0.03125, %v1733_v24 }
 0xd92   :  { %v1741_v28 = vsub.f32 %v1737_v27, %v1739_v26 }
 0xd93   :  { %v1736_v29 = vpop.xlane.xlu0 %1735 }
 0xd94   :  { %v1745_v31 = vadd.f32 1e-05, %v1741_v28  ;;  %v1738_v32 = vmul.f32 0.03125, %v1736_v29 }
 0xd96   :  { %4537 = vrsqrt.f32 %v1745_v31  ;;  %v1742_v19 = vsub.f32 %v1738_v32, %v1740_v30 }
 0xd98   :  { %v1746_v33 = vadd.f32 1e-05, %v1742_v19 }
 0xd9a   :  { %4539 = vrsqrt.f32 %v1746_v33  ;;  %v193_v33 = vld [vmem:[#allocation7 + $0x68] sm:$0xff] }
 0xda0   :  { %v4538_v35 = vpop.eup %4537 }
 0xda1   :  { %v1749_v37 = vmul.f32 %v4538_v35, %v1743_v34 }
 0xda3   :  { %v1751_v40 = vmul.f32 %v1749_v37, %v186_v36  ;;  %v192_v36 = vld [vmem:[#allocation7 + $0x60] sm:$0xff] }
 0xda4   :  { %v4540_v41 = vpop.eup %4539 }
 0xda5   :  { %v1750_v43 = vmul.f32 %v4540_v41, %v1744_v39  ;;  %v1753_v44 = vadd.f32 %v1751_v40, %v189_v38  ;;  %v195_v38 = vld [vmem:[#allocation7 + $0x70] sm:$0xff]  ;;  %v196_v41 = vld [vmem:[#allocation7 + $0x78] sm:$0xff] }
 0xda7   :  { %4235 = vmatprep.mubr.msk.f32.mxu0 %vm197_vm1, %v1753_v44  ;;  %v1752_v46 = vmul.f32 %v1750_v43, %v187_v42 }
 0xda9   :  { %v1754_v47 = vadd.f32 %v1752_v46, %v190_v45  ;;  %v1981_v45 = vld [vmem:[#allocation7 + $0xa0] sm:$0xff] }
 0xdab   :  { %4236 = vmatmul.mubr.msk.f32.vlgmr.msra.gmra.mrb[22].mxu0 %vm197_vm1, %v1754_v47 }
 0xdac   :  { %4443 = vmatpush3.bf16.msra.mxu0 %v4440_v9 }
 0xdad   :  { %4445 = vmatprep.subr.bf16.mxu0 %v4444_v15 }
 0xdb0   :  { %4447 = vmatpush3.bf16.msra.mxu0 %v4444_v15 }
 0xdb1   :  { %4268 = vmatprep.subr.mxu0 %v4688_v13 }
 0xe7e   :  { %v4237_v53 = vpop.f32.mrb[22].mxu0 }
 0xe7f   :  { %v1833_v56 = vadd.f32 %v4237_v53, %v181_v51  ;;  %v1827_v54 = vpop.f32.mrb[23].mxu0 }
 0xe80   :  { %v1828_v55 = vadd.f32 %v1827_v54, %v180_v52 }
 0xe81   :  { %v1837_v59 = vmax.f32 %v1833_v56, 0.0 }
 0xe82   :  { %v1836_v57 = vmax.f32 %v1828_v55, 0.0 }
 0xe84   :  { %4254 = vmatprep.mubr.msk.f32.mxu1 %vm1838_vm5, %v1836_v57 }
 0xe85   :  { %4255 = vmatmul.mubr.msk.f32.vlgmr.msra.gmra.mrb[16].mxu1 %vm1838_vm5, %v1837_v59 }
 0xe86   :  { %4280 = vmatprep.mubr.msk.f32.mxu1 %vm4689_vm2, %v4688_v13 }
 0xf58   :  { %v4256_v62 = vpop.f32.mrb[16].mxu1 }
 0xf59   :  { %v1917_v58 = vadd.f32 %v4256_v62, %v184_v60  ;;  %v1911_v63 = vpop.f32.mrb[17].mxu1 }
 0xf5a   :  { %v1912_v0 = vadd.f32 %v1911_v63, %v183_v61 }
 0xf5b   :  { %v1921_v1 = vadd.f32 %v1917_v58, %v1754_v47 }
 0xf5c   :  { %v1920_v2 = vadd.f32 %v1912_v0, %v1753_v44  ;;  %v1982_v44 = vld [vmem:[#allocation7 + $0xa8] sm:$0xff] }
 0xf5d   :  { %v1925_v3 = vsel %vm197_vm1, %v1921_v1, 0.0  ;;  %v1931_v11 = vmul.f32 %v1921_v1, %v1921_v1 }
 0xf5e   :  { %1926 = vadd.xlane.f32.xlu0 %v1925_v3  ;;  %v1922_v12 = vsel %vm197_vm1, %v1920_v2, 0.0  ;;  %v1930_v4 = vmul.f32 %v1920_v2, %v1920_v2 }
 0xf5f   :  { %1923 = vadd.xlane.f32.xlu1 %v1922_v12  ;;  %v1935_v5 = vsel %vm197_vm1, %v1931_v11, 0.0 }
 0xf60   :  { %v1932_v6 = vsel %vm197_vm1, %v1930_v4, 0.0 }
 0xf62   :  { %1936 = vadd.xlane.f32.xlu0 %v1935_v5 }
 0xf63   :  { %1933 = vadd.xlane.f32.xlu1 %v1932_v6 }
 0xfeb   :  { %v1927_v16 = vpop.xlane.xlu0 %1926 }
 0xfec   :  { %v1929_v18 = vmul.f32 0.03125, %v1927_v16  ;;  %v1924_v20 = vpop.xlane.xlu1 %1923 }
 0xfed   :  { %v1928_v21 = vmul.f32 0.03125, %v1924_v20 }
 0xfee   :  { %v1941_v23 = vmul.f32 %v1929_v18, %v1929_v18  ;;  %v1945_v31 = vsub.f32 %v1921_v1, %v1929_v18 }
 0xfef   :  { %v1937_v22 = vpop.xlane.xlu0 %1936  ;;  %v1940_v25 = vmul.f32 %v1928_v21, %v1928_v21  ;;  %v1944_v19 = vsub.f32 %v1920_v2, %v1928_v21 }
 0xff0   :  { %v1939_v17 = vmul.f32 0.03125, %v1937_v22  ;;  %v1934_v24 = vpop.xlane.xlu1 %1933 }
 0xff1   :  { %v1938_v26 = vmul.f32 0.03125, %v1934_v24 }
 0xff2   :  { %v1943_v27 = vsub.f32 %v1939_v17, %v1941_v23 }
 0xff3   :  { %v1942_v28 = vsub.f32 %v1938_v26, %v1940_v25 }
 0xff4   :  { %v1947_v29 = vadd.f32 1e-05, %v1943_v27 }
 0xff5   :  { %v1946_v30 = vadd.f32 1e-05, %v1942_v28 }
 0xff6   :  { %4541 = vrsqrt.f32 %v1947_v29 }
 0xff7   :  { %4543 = vrsqrt.f32 %v1946_v30 }
0x1000   :  { %v4542_v32 = vpop.eup %4541 }
0x1001   :  { %v4544_v34 = vpop.eup %4543  ;;  %v1951_v35 = vmul.f32 %v4542_v32, %v1945_v31 }
0x1002   :  { %v1950_v37 = vmul.f32 %v4544_v34, %v1944_v19 }
0x1003   :  { %v1953_v39 = vmul.f32 %v1951_v35, %v193_v33 }
0x1004   :  { %v1952_v40 = vmul.f32 %v1950_v37, %v192_v36 }
0x1005   :  { %v5068_v43 = vadd.f32 %v1953_v39, %v196_v41 }
0x1006   :  { %v5066_v42 = vadd.f32 %v1952_v40, %v195_v38 }
0x1008   :  { %4265 = vmatprep.mubr.msk.f32.mxu0 %vm197_vm1, %v5066_v42 }
0x1009   :  { %4266 = vmatmul.mubr.msk.f32.vlgmr.msra.gmra.mrb[24].mxu0 %vm197_vm1, %v5068_v43 }
0x100a   :  { %4270 = vmatprep.mubr.msk.f32.mxu0 %vm4689_vm2, %v4688_v13 }
0x10dc   :  { %v4267_v46 = vpop.f32.mrb[24].mxu0 }
0x10dd   :  { %v5076_v47 = vadd.f32 %v4267_v46, %v1982_v44  ;;  %v2076_v48 = vpop.f32.mrb[25].mxu0 }
0x10de   :  { %v5078_v49 = vadd.f32 %v2076_v48, %v1981_v45 }
0x10df   :  { %2163 = vrot.lane.b32.xlu0 %v5076_v47, %s4690_s23 }
0x10e0   :  { %2086 = vrot.lane.b32.xlu1 %v5078_v49, %s4690_s23 }
0x1151   :  { %v2164_v51 = vpop.permute.xlu0 %2163 }
0x1152   :  { %v2087_v50 = vpop.permute.xlu1 %2086 }
0x1153   :  { %4269 = vmatpush3.xpose.msk.msra.mxu0 %vm282_vm3, %v2087_v50 }
0x1154   :  { %4273 = vmatprep.subr.mxu0 %v4688_v13 }
0x1156   :  { %4271 = vmatmul.mubr.msk.f32.vlgmr.msra.gmra.mrb[26].mxu0 %vm282_vm3, %v5078_v49 }
0x1157   :  { %4274 = vmatpush3.xpose.msk.msra.mxu0 %vm282_vm3, %v2164_v51  ;;  %4275 = vmatprep.mubr.msk.f32.mxu0 %vm4689_vm2, %v4688_v13 }
0x1158   :  { %4283 = vmatprep.subr.mxu0 %v4688_v13 }
0x115a   :  { %4276 = vmatmul.mubr.msk.f32.vlgmr.msra.gmra.mrb[28].mxu0 %vm282_vm3, %v5076_v47 }
0x115b   :  { %4285 = vmatprep.mubr.msk.f32.mxu0 %vm4689_vm2, %v4688_v13 }
0x1229   :  { %v2158_v52 = vpop.f32.mrb[26].mxu0 }
0x122a   :  { %v2239_v53 = vmul.f32 0.35355338, %v2158_v52  ;;  %v4272_v56 = vpop.f32.mrb[27].mxu0 }
0x122c   :  { %v2241_v54 = vsel %vm282_vm3, %v2239_v53, -inf }
0x122d   :  { %2242 = vmax.xlane.f32.xlu1 %v2241_v54  ;;  %v2235_v55 = vpop.f32.mrb[28].mxu0 }
0x122e   :  { %v2240_v57 = vmul.f32 0.35355338, %v2235_v55  ;;  %v4277_v59 = vpop.f32.mrb[29].mxu0 }
0x1230   :  { %v2244_v60 = vsel %vm282_vm3, %v2240_v57, -inf }
0x1231   :  { %2245 = vmax.xlane.f32.xlu0 %v2244_v60 }
0x123e   :  { %2263 = vrot.lane.b32.xlu1 %v5078_v49, %s4691_s24 }
0x1242   :  { %2417 = vrot.lane.b32.xlu1 %v5078_v49, %s4692_s1 }
0x1246   :  { %2495 = vrot.lane.b32.xlu1 %v5076_v47, %s4692_s1 }
0x1247   :  { %2339 = vrot.lane.b32.xlu0 %v5076_v47, %s4691_s24 }
0x12ba   :  { %v2243_v61 = vpop.xlane.xlu1 %2242 }
0x12bb   :  { %v2247_v62 = vsub.f32 %v2239_v53, %v2243_v61 }
0x12bd   :  { %v2249_v58 = vmul.f32 1.442695, %v2247_v62 }
0x12be   :  { %v2264_v63 = vpop.permute.xlu1 %2263  ;;  %v2246_v0 = vpop.xlane.xlu0 %2245 }
0x12bf   :  { %4545 = vpow2.f32 %v2249_v58  ;;  %v2248_v1 = vsub.f32 %v2240_v57, %v2246_v0  ;;  %4279 = vmatpush3.msra.mxu1 %v2264_v63 }
0x12c0   :  { %4288 = vmatprep.subr.mxu1 %v4688_v13 }
0x12c1   :  { %v2251_v2 = vmul.f32 1.442695, %v2248_v1 }
0x12c2   :  { %v2340_v3 = vpop.permute.xlu0 %2339  ;;  %v2418_v6 = vpop.permute.xlu1 %2417 }
0x12c3   :  { %4547 = vpow2.f32 %v2251_v2  ;;  %4284 = vmatpush3.msra.mxu0 %v2340_v3 }
0x12c4   :  { %4293 = vmatprep.subr.mxu0 %v4688_v13 }
0x12c6   :  { %v2496_v7 = vpop.permute.xlu1 %2495 }
0x12c9   :  { %v4546_v11 = vpop.eup %4545 }
0x12ca   :  { %v2253_v12 = vsel %vm282_vm3, %v4546_v11, 0.0 }
0x12cb   :  { %2254 = vadd.xlane.f32.xlu1 %v2253_v12 }
0x12cd   :  { %v4548_v4 = vpop.eup %4547 }
0x12ce   :  { %v2256_v5 = vsel %vm282_vm3, %v4548_v4, 0.0 }
0x12cf   :  { %2257 = vadd.xlane.f32.xlu0 %v2256_v5 }
0x12dc   :  { %2493 = vrot.lane.b32.xlu1 %v5076_v47, %s4693_s25 }
0x12e5   :  { %2415 = vrot.lane.b32.xlu0 %v5078_v49, %s4693_s25 }
0x1358   :  { %v2255_v8 = vpop.xlane.xlu1 %2254 }
0x1359   :  { %4549 = vrcp.f32 %v2255_v8 }
0x135c   :  { %v2258_v9 = vpop.xlane.xlu0 %2257  ;;  %v2494_v20 = vpop.permute.xlu1 %2493 }
0x135d   :  { %4551 = vrcp.f32 %v2258_v9 }
0x1360   :  { %v2416_v18 = vpop.permute.xlu0 %2415 }
0x1363   :  { %v4550_v10 = vpop.eup %4549 }
0x1364   :  { %v2261_v14 = vmul.f32 %v4550_v10, %v4546_v11 }
0x1366   :  { %4281 = vmatmul.mubr.msk.f32.vlgmr.msra.gmra.mrb[18].mxu1 %vm282_vm3, %v2261_v14 }
0x1367   :  { %v4552_v15 = vpop.eup %4551  ;;  %4289 = vmatpush3.xpose.msk.msra.mxu1 %vm282_vm3, %v2418_v6  ;;  %4290 = vmatprep.mubr.msk.f32.mxu1 %vm4689_vm2, %v4688_v13 }
0x1368   :  { %v2262_v16 = vmul.f32 %v4552_v15, %v4548_v4  ;;  %4298 = vmatprep.subr.mxu1 %v4688_v13 }
0x136a   :  { %4286 = vmatmul.mubr.msk.f32.vlgmr.msra.gmra.mrb[30].mxu0 %vm282_vm3, %v2262_v16  ;;  %4291 = vmatmul.mubr.msk.f32.vlgmr.msra.gmra.mrb[20].mxu1 %vm282_vm3, %v2416_v18 }
0x136b   :  { %4294 = vmatpush3.xpose.msk.msra.mxu0 %vm282_vm3, %v2496_v7  ;;  %4295 = vmatprep.mubr.msk.f32.mxu0 %vm4689_vm2, %v4688_v13 }
0x136c   :  { %4303 = vmatprep.subr.mxu0 %v4688_v13  ;;  %4300 = vmatprep.mubr.msk.f32.mxu1 %vm4689_vm2, %v4688_v13 }
0x136e   :  { %4296 = vmatmul.mubr.msk.f32.vlgmr.msra.gmra.mrb[32].mxu0 %vm282_vm3, %v2494_v20 }
0x136f   :  { %4305 = vmatprep.mubr.msk.f32.mxu0 %vm4689_vm2, %v4688_v13 }
0x1439   :  { %v5130_v21 = vpop.f32.mrb[18].mxu1 }
0x143a   :  { %v4282_v22 = vpop.f32.mrb[19].mxu1 }
0x143d   :  { %v5132_v23 = vpop.f32.mrb[30].mxu0  ;;  %v2489_v17 = vpop.f32.mrb[20].mxu1 }
0x143e   :  { %v2571_v24 = vmul.f32 0.35355338, %v2489_v17  ;;  %v4287_v25 = vpop.f32.mrb[31].mxu0  ;;  %v4292_v26 = vpop.f32.mrb[21].mxu1 }
0x1440   :  { %v2573_v27 = vsel %vm282_vm3, %v2571_v24, -inf }
0x1441   :  { %2574 = vmax.xlane.f32.xlu0 %v2573_v27  ;;  %v2567_v28 = vpop.f32.mrb[32].mxu0 }
0x1442   :  { %v2572_v29 = vmul.f32 0.35355338, %v2567_v28  ;;  %v4297_v30 = vpop.f32.mrb[33].mxu0 }
0x1444   :  { %v2576_v31 = vsel %vm282_vm3, %v2572_v29, -inf }
0x1445   :  { %2577 = vmax.xlane.f32.xlu1 %v2576_v31 }
0x1456   :  { %2595 = vrot.lane.b32.xlu1 %v5078_v49, %s4694_s26 }
0x1457   :  { %2671 = vrot.lane.b32.xlu0 %v5076_v47, %s4694_s26 }
0x145a   :  { %2749 = vrot.lane.b32.xlu1 %v5078_v49, %s4696_s29 }
0x145e   :  { %2827 = vrot.lane.b32.xlu1 %v5076_v47, %s4696_s29 }
0x1462   :  { %2825 = vrot.lane.b32.xlu1 %v5076_v47, %s4695_s28 }
0x14ce   :  { %v2575_v32 = vpop.xlane.xlu0 %2574 }
0x14cf   :  { %v2579_v19 = vsub.f32 %v2571_v24, %v2575_v32 }
0x14d1   :  { %v2581_v33 = vmul.f32 1.442695, %v2579_v19 }
0x14d2   :  { %v2672_v34 = vpop.permute.xlu0 %2671  ;;  %v2578_v35 = vpop.xlane.xlu1 %2577 }
0x14d3   :  { %4553 = vpow2.f32 %v2581_v33  ;;  %v2580_v36 = vsub.f32 %v2572_v29, %v2578_v35  ;;  %4304 = vmatpush3.msra.mxu0 %v2672_v34 }
0x14d4   :  { %4313 = vmatprep.subr.mxu0 %v4688_v13 }
0x14d5   :  { %v2583_v37 = vmul.f32 1.442695, %v2580_v36 }
0x14d6   :  { %v2596_v38 = vpop.permute.xlu1 %2595 }
0x14d7   :  { %4555 = vpow2.f32 %v2583_v37  ;;  %4299 = vmatpush3.msra.mxu1 %v2596_v38 }
0x14d8   :  { %4308 = vmatprep.subr.mxu1 %v4688_v13 }
0x14da   :  { %v2750_v48 = vpop.permute.xlu1 %2749 }
0x14dd   :  { %v4554_v39 = vpop.eup %4553 }
0x14de   :  { %v2585_v40 = vsel %vm282_vm3, %v4554_v39, 0.0  ;;  %v2828_v53 = vpop.permute.xlu1 %2827 }
0x14df   :  { %2586 = vadd.xlane.f32.xlu0 %v2585_v40 }
0x14e1   :  { %v4556_v41 = vpop.eup %4555 }
0x14e2   :  { %v2588_v44 = vsel %vm282_vm3, %v4556_v41, 0.0  ;;  %v2826_v55 = vpop.permute.xlu1 %2825 }
0x14e3   :  { %2589 = vadd.xlane.f32.xlu0 %v2588_v44 }
0x14f9   :  { %2747 = vrot.lane.b32.xlu0 %v5078_v49, %s4695_s28 }
0x156c   :  { %v2587_v45 = vpop.xlane.xlu0 %2586 }
0x156d   :  { %4557 = vrcp.f32 %v2587_v45 }
0x1570   :  { %v2590_v46 = vpop.xlane.xlu0 %2589 }
0x1571   :  { %4559 = vrcp.f32 %v2590_v46 }
0x1574   :  { %v2748_v54 = vpop.permute.xlu0 %2747 }
0x1577   :  { %v4558_v50 = vpop.eup %4557 }
0x1578   :  { %v2593_v51 = vmul.f32 %v4558_v50, %v4554_v39 }
0x157a   :  { %4301 = vmatmul.mubr.msk.f32.vlgmr.msra.gmra.mrb[22].mxu1 %vm282_vm3, %v2593_v51 }
0x157b   :  { %v4560_v52 = vpop.eup %4559  ;;  %4309 = vmatpush3.xpose.msk.msra.mxu1 %vm282_vm3, %v2750_v48  ;;  %4310 = vmatprep.mubr.msk.f32.mxu1 %vm4689_vm2, %v4688_v13 }
0x157c   :  { %v2594_v56 = vmul.f32 %v4560_v52, %v4556_v41  ;;  %4318 = vmatprep.subr.mxu1 %v4688_v13 }
0x157e   :  { %4306 = vmatmul.mubr.msk.f32.vlgmr.msra.gmra.mrb[34].mxu0 %vm282_vm3, %v2594_v56  ;;  %4311 = vmatmul.mubr.msk.f32.vlgmr.msra.gmra.mrb[24].mxu1 %vm282_vm3, %v2748_v54 }
0x157f   :  { %4314 = vmatpush3.xpose.msk.msra.mxu0 %vm282_vm3, %v2828_v53  ;;  %4315 = vmatprep.mubr.msk.f32.mxu0 %vm4689_vm2, %v4688_v13 }
0x1580   :  { %4323 = vmatprep.subr.mxu0 %v4688_v13  ;;  %4320 = vmatprep.mubr.msk.f32.mxu1 %vm4689_vm2, %v4688_v13 }
0x1582   :  { %4316 = vmatmul.mubr.msk.f32.vlgmr.msra.gmra.mrb[36].mxu0 %vm282_vm3, %v2826_v55 }
0x1583   :  { %4325 = vmatprep.mubr.msk.f32.mxu0 %vm4689_vm2, %v4688_v13 }
0x164d   :  { %v5168_v57 = vpop.f32.mrb[22].mxu1 }
0x164e   :  { %v4302_v59 = vpop.f32.mrb[23].mxu1 }
0x1651   :  { %v5170_v60 = vpop.f32.mrb[34].mxu0  ;;  %v2821_v61 = vpop.f32.mrb[24].mxu1 }
0x1652   :  { %v2903_v62 = vmul.f32 0.35355338, %v2821_v61  ;;  %v4307_v58 = vpop.f32.mrb[35].mxu0  ;;  %v4312_v63 = vpop.f32.mrb[25].mxu1 }
0x1653   :  { %v3941_v58 = vld [vmem:[%s5328_s3 + $0x28] sm:$0xff] }
0x1654   :  { %v2905_v0 = vsel %vm282_vm3, %v2903_v62, -inf }
0x1655   :  { %2906 = vmax.xlane.f32.xlu0 %v2905_v0  ;;  %v2899_v1 = vpop.f32.mrb[36].mxu0  ;;  %v3942_v0 = vld [vmem:[%s5328_s3 + $0x30] sm:$0xff] }
0x1656   :  { %v2904_v2 = vmul.f32 0.35355338, %v2899_v1  ;;  %v4317_v3 = vpop.f32.mrb[37].mxu0  ;;  %v3943_v1 = vld [vmem:[%s5328_s3 + $0x38] sm:$0xff] }
0x1658   :  { %v2908_v11 = vsel %vm282_vm3, %v2904_v2, -inf }
0x1659   :  { %2909 = vmax.xlane.f32.xlu1 %v2908_v11 }
0x166a   :  { %2927 = vrot.lane.b32.xlu1 %v5078_v49, %s4697_s30 }
0x166b   :  { %3003 = vrot.lane.b32.xlu0 %v5076_v47, %s4697_s30 }
0x166e   :  { %3081 = vrot.lane.b32.xlu1 %v5078_v49, %s4698_s8 }
0x1672   :  { %3159 = vrot.lane.b32.xlu1 %v5076_v47, %s4698_s8 }
0x1676   :  { %3157 = vrot.lane.b32.xlu1 %v5076_v47, %s4699_s9 }
0x16e2   :  { %v2907_v12 = vpop.xlane.xlu0 %2906 }
0x16e3   :  { %v2911_v4 = vsub.f32 %v2903_v62, %v2907_v12 }
0x16e5   :  { %v2913_v5 = vmul.f32 1.442695, %v2911_v4 }
0x16e6   :  { %v3004_v6 = vpop.permute.xlu0 %3003  ;;  %v2910_v7 = vpop.xlane.xlu1 %2909 }
0x16e7   :  { %4561 = vpow2.f32 %v2913_v5  ;;  %v2912_v8 = vsub.f32 %v2904_v2, %v2910_v7  ;;  %4324 = vmatpush3.msra.mxu0 %v3004_v6  ;;  %v4452_v2 = vpack.c.bf16 %v3943_v1, %v3942_v0  ;;  %v1993_v0 = vld [vmem:[#allocation7 + $0xe0] sm:$0xff] }
0x16e8   :  { %4333 = vmatprep.subr.mxu0 %v4688_v13 }
0x16e9   :  { %v2915_v9 = vmul.f32 1.442695, %v2912_v8 }
0x16ea   :  { %v2928_v10 = vpop.permute.xlu1 %2927 }
0x16eb   :  { %4563 = vpow2.f32 %v2915_v9  ;;  %4319 = vmatpush3.msra.mxu1 %v2928_v10 }
0x16ec   :  { %4328 = vmatprep.subr.mxu1 %v4688_v13 }
0x16ee   :  { %v3082_v17 = vpop.permute.xlu1 %3081 }
0x16f1   :  { %v4562_v14 = vpop.eup %4561 }
0x16f2   :  { %v2917_v15 = vsel %vm282_vm3, %v4562_v14, 0.0  ;;  %v3160_v27 = vpop.permute.xlu1 %3159 }
0x16f3   :  { %2918 = vadd.xlane.f32.xlu0 %v2917_v15 }
0x16f5   :  { %v4564_v16 = vpop.eup %4563 }
0x16f6   :  { %v2920_v18 = vsel %vm282_vm3, %v4564_v16, 0.0  ;;  %v3158_v30 = vpop.permute.xlu1 %3157 }
0x16f7   :  { %2921 = vadd.xlane.f32.xlu0 %v2920_v18 }
0x170d   :  { %3079 = vrot.lane.b32.xlu0 %v5078_v49, %s4699_s9 }
0x1780   :  { %v2919_v20 = vpop.xlane.xlu0 %2918 }
0x1781   :  { %4565 = vrcp.f32 %v2919_v20 }
0x1784   :  { %v2922_v22 = vpop.xlane.xlu0 %2921 }
0x1785   :  { %4567 = vrcp.f32 %v2922_v22 }
0x1788   :  { %v3080_v29 = vpop.permute.xlu0 %3079 }
0x178b   :  { %v4566_v24 = vpop.eup %4565 }
0x178c   :  { %v2925_v25 = vmul.f32 %v4566_v24, %v4562_v14 }
0x178e   :  { %4321 = vmatmul.mubr.msk.f32.vlgmr.msra.gmra.mrb[26].mxu1 %vm282_vm3, %v2925_v25 }
0x178f   :  { %v4568_v26 = vpop.eup %4567  ;;  %4329 = vmatpush3.xpose.msk.msra.mxu1 %vm282_vm3, %v3082_v17  ;;  %4330 = vmatprep.mubr.msk.f32.mxu1 %vm4689_vm2, %v4688_v13  ;;  %v1985_v17 = vld [vmem:[#allocation7 + $0xb8] sm:$0xff] }
0x1790   :  { %v2926_v28 = vmul.f32 %v4568_v26, %v4564_v16  ;;  %4338 = vmatprep.subr.mxu1 %v4688_v13 }
0x1792   :  { %4326 = vmatmul.mubr.msk.f32.vlgmr.msra.gmra.mrb[38].mxu0 %vm282_vm3, %v2926_v28  ;;  %4331 = vmatmul.mubr.msk.f32.vlgmr.msra.gmra.mrb[28].mxu1 %vm282_vm3, %v3080_v29 }
0x1793   :  { %4334 = vmatpush3.xpose.msk.msra.mxu0 %vm282_vm3, %v3160_v27  ;;  %4335 = vmatprep.mubr.msk.f32.mxu0 %vm4689_vm2, %v4688_v13 }
0x1794   :  { %4343 = vmatprep.subr.mxu0 %v4688_v13  ;;  %4340 = vmatprep.mubr.msk.f32.mxu1 %vm4689_vm2, %v4688_v13 }
0x1796   :  { %4336 = vmatmul.mubr.msk.f32.vlgmr.msra.gmra.mrb[40].mxu0 %vm282_vm3, %v3158_v30 }
0x1797   :  { %4345 = vmatprep.mubr.msk.f32.mxu0 %vm4689_vm2, %v4688_v13 }
0x1861   :  { %v2999_v31 = vpop.f32.mrb[26].mxu1 }
0x1862   :  { %v4322_v32 = vpop.f32.mrb[27].mxu1 }
0x1865   :  { %v3075_v19 = vpop.f32.mrb[38].mxu0  ;;  %v3153_v33 = vpop.f32.mrb[28].mxu1 }
0x1866   :  { %v3235_v34 = vmul.f32 0.35355338, %v3153_v33  ;;  %v4327_v35 = vpop.f32.mrb[39].mxu0  ;;  %v4332_v36 = vpop.f32.mrb[29].mxu1 }
0x1867   :  { %v3946_v35 = vld [vmem:[%s5329_s4 + $0x30] sm:$0xff]  ;;  %v3947_v36 = vld [vmem:[%s5329_s4 + $0x38] sm:$0xff] }
0x1868   :  { %v3237_v37 = vsel %vm282_vm3, %v3235_v34, -inf }
0x1869   :  { %3238 = vmax.xlane.f32.xlu0 %v3237_v37  ;;  %v3231_v38 = vpop.f32.mrb[40].mxu0  ;;  %v4460_v37 = vpack.c.bf16 %v3947_v36, %v3946_v35 }
0x186a   :  { %v3236_v39 = vmul.f32 0.35355338, %v3231_v38  ;;  %v4337_v40 = vpop.f32.mrb[41].mxu0  ;;  %v3948_v38 = vld [vmem:[%s5330_s5 + $0x40] sm:$0xff] }
0x186b   :  { %v3950_v40 = vld [vmem:[%s5330_s5 + $0x50] sm:$0xff] }
0x186c   :  { %v3240_v41 = vsel %vm282_vm3, %v3236_v39, -inf }
0x186d   :  { %3241 = vmax.xlane.f32.xlu1 %v3240_v41 }
0x187e   :  { %3259 = vrot.lane.b32.xlu1 %v5078_v49, %s4700_s10 }
0x1882   :  { %3413 = vrot.lane.b32.xlu1 %v5168_v57, %s4686_s14 }
0x1886   :  { %3415 = vrot.lane.b32.xlu1 %v5170_v60, %s4686_s14 }
0x188a   :  { %3423 = vrot.lane.b32.xlu1 %v3075_v19, %s4701_s11 }
0x18f6   :  { %v3239_v13 = vpop.xlane.xlu0 %3238 }
0x18f7   :  { %v3243_v44 = vsub.f32 %v3235_v34, %v3239_v13  ;;  %v3951_v13 = vld [vmem:[%s5330_s5 + $0x58] sm:$0xff] }
0x18f9   :  { %v3245_v45 = vmul.f32 1.442695, %v3243_v44  ;;  %v4468_v44 = vpack.c.bf16 %v3951_v13, %v3950_v40 }
0x18fa   :  { %v3242_v46 = vpop.xlane.xlu1 %3241 }
0x18fb   :  { %4569 = vpow2.f32 %v3245_v45  ;;  %v3244_v48 = vsub.f32 %v3236_v39, %v3242_v46  ;;  %v3949_v39 = vld [vmem:[%s5330_s5 + $0x48] sm:$0xff]  ;;  %v3952_v45 = vld [vmem:[%s5330_s5 + $0x60] sm:$0xff] }
0x18fc   :  { %v4464_v41 = vpack.c.bf16 %v3949_v39, %v3948_v38  ;;  %v3953_v46 = vld [vmem:[%s5330_s5 + $0x68] sm:$0xff] }
0x18fd   :  { %v3247_v50 = vmul.f32 1.442695, %v3244_v48  ;;  %v4472_v48 = vpack.c.bf16 %v3953_v46, %v3952_v45 }
0x18fe   :  { %v3260_v51 = vpop.permute.xlu1 %3259 }
0x18ff   :  { %4571 = vpow2.f32 %v3247_v50  ;;  %4339 = vmatpush3.msra.mxu1 %v3260_v51 }
0x1902   :  { %v3414_v5 = vpop.permute.xlu1 %3413 }
0x1903   :  { %v3435_v8 = vsel %vm282_vm3, %v5130_v21, %v3414_v5  ;;  %v1984_v21 = vld [vmem:[#allocation7 + $0xb0] sm:$0xff] }
0x1905   :  { %v4570_v52 = vpop.eup %4569 }
0x1906   :  { %v3249_v49 = vsel %vm282_vm3, %v4570_v52, 0.0  ;;  %v3416_v6 = vpop.permute.xlu1 %3415 }
0x1907   :  { %3250 = vadd.xlane.f32.xlu0 %v3249_v49  ;;  %v3436_v16 = vsel %vm282_vm3, %v5132_v23, %v3416_v6 }
0x1909   :  { %v4572_v53 = vpop.eup %4571 }
0x190a   :  { %v3252_v56 = vsel %vm282_vm3, %v4572_v53, 0.0  ;;  %v3424_v9 = vpop.permute.xlu1 %3423 }
0x190b   :  { %3253 = vadd.xlane.f32.xlu0 %v3252_v56  ;;  %v3438_v18 = vsel %vm72_vm0, %v3436_v16, %v3424_v9  ;;  %v1988_v16 = vld [vmem:[#allocation7 + $0xc8] sm:$0xff] }
0x1921   :  { %3335 = vrot.lane.b32.xlu0 %v5076_v47, %s4700_s10  ;;  %v3940_v47 = vld [vmem:[%s5328_s3 + $0x20] sm:$0xff] }
0x1922   :  { %v4448_v63 = vpack.c.bf16 %v3941_v58, %v3940_v47 }
0x1924   :  { %4449 = vmatprep.subr.bf16.mxu1 %v4448_v63 }
0x1925   :  { %3421 = vrot.lane.b32.xlu0 %v2999_v31, %s4701_s11 }
0x1994   :  { %v3251_v54 = vpop.xlane.xlu0 %3250 }
0x1995   :  { %4573 = vrcp.f32 %v3251_v54 }
0x1998   :  { %v3254_v55 = vpop.xlane.xlu0 %3253 }
0x1999   :  { %4575 = vrcp.f32 %v3254_v55 }
0x199c   :  { %v3336_v57 = vpop.permute.xlu0 %3335 }
0x199d   :  { %4344 = vmatpush3.msra.mxu0 %v3336_v57 }
0x199f   :  { %v4574_v59 = vpop.eup %4573 }
0x19a0   :  { %v3257_v60 = vmul.f32 %v4574_v59, %v4570_v52  ;;  %v3422_v7 = vpop.permute.xlu0 %3421 }
0x19a1   :  { %v3437_v10 = vsel %vm72_vm0, %v3435_v8, %v3422_v7  ;;  %v1997_v7 = vld [vmem:[#allocation7 + $0xf8] sm:$0xff] }
0x19a2   :  { %4341 = vmatmul.mubr.msk.f32.vlgmr.msra.gmra.mrb[30].mxu1 %vm282_vm3, %v3257_v60 }
0x19a3   :  { %v4576_v61 = vpop.eup %4575  ;;  %4451 = vmatpush3.bf16.msra.mxu1 %v4448_v63 }
0x19a4   :  { %v3258_v62 = vmul.f32 %v4576_v61, %v4572_v53  ;;  %4453 = vmatprep.subr.bf16.mxu1 %v4452_v2 }
0x19a6   :  { %4346 = vmatmul.mubr.msk.f32.vlgmr.msra.gmra.mrb[42].mxu0 %vm282_vm3, %v3258_v62 }
0x19a7   :  { %4455 = vmatpush3.bf16.msra.mxu1 %v4452_v2  ;;  %v1996_v2 = vld [vmem:[#allocation7 + $0xf0] sm:$0xff] }
0x19a8   :  { %4465 = vmatprep.subr.bf16.mxu1 %v4464_v41 }
0x1a75   :  { %v3331_v3 = vpop.f32.mrb[30].mxu1 }
0x1a76   :  { %3429 = vrot.lane.b32.xlu0 %v3331_v3, %s4702_s6  ;;  %v4342_v11 = vpop.f32.mrb[31].mxu1 }
0x1a79   :  { %v3407_v12 = vpop.f32.mrb[42].mxu0 }
0x1a7a   :  { %3431 = vrot.lane.b32.xlu1 %v3407_v12, %s4702_s6  ;;  %v4347_v4 = vpop.f32.mrb[43].mxu0 }
0x1a7b   :  { %v1994_v4 = vld [vmem:[#allocation7 + $0xe8] sm:$0xff] }
0x1ae8   :  { %v3430_v14 = vpop.permute.xlu0 %3429 }
0x1ae9   :  { %v3439_v15 = vsel %vm1634_vm4, %v3437_v10, %v3430_v14  ;;  %v3954_v10 = vld [vmem:[%s5330_s5 + $0x70] sm:$0xff]  ;;  %v3955_v14 = vld [vmem:[%s5330_s5 + $0x78] sm:$0xff]  ;;  %s4703_s5 = smov [#allocation8]  }
0x1aea   :  { %4356 = vmatprep.mubr.msk.f32.mxu1 %vm197_vm1, %v3439_v15  ;;  %v4476_v15 = vpack.c.bf16 %v3955_v14, %v3954_v10  ;;  %s3889_s26 = sshll.u32 %s4703_s5, 4  ;;  %s3890_s26 = int_to_ptr.vmem [resolvable:$true] %s3889_s26 }
0x1aeb   :  { %s4655_s28 = scalar_lea.vmem %s3890_s26, 256  ;;  %p4660_p11 = scmp.lt.s32.totalorder %s3890_s26, %s3890_s26 }
0x1aec   :  { %v3432_v20 = vpop.permute.xlu1 %3431  ;;  %p4656_p10 = scmp.ne.s32.totalorder %s3890_s26, %s4655_s28  ;;  %p4661_p12 = scmp.lt.s32.totalorder %s4655_s28, %s4655_s28 }
0x1aed   :  { %v3440_v22 = vsel %vm1634_vm4, %v3438_v18, %v3432_v20  ;;  %v1987_v18 = vld [vmem:[#allocation7 + $0xc0] sm:$0xff] }
0x1aee   :  { %4357 = vmatmul.mubr.msk.f32.vlgmr.msra.gmra.mrb[32].mxu1 %vm197_vm1, %v3440_v22  ;;  %p4662_p13 = por %p4661_p12, %p4660_p11 }
0x1aef   :  { %4467 = vmatpush3.bf16.msra.mxu1 %v4464_v41 }
0x1af0   :  { %4469 = vmatprep.subr.bf16.mxu1 %v4468_v44  ;;  %p4663_p0 = pnand %p4662_p13, %p4656_p10 }
0x1af3   :  { %4471 = vmatpush3.bf16.msra.mxu1 %v4468_v44 }
0x1af4   :  { %4473 = vmatprep.subr.bf16.mxu1 %v4472_v48 }
0x1af7   :  { %4475 = vmatpush3.bf16.msra.mxu1 %v4472_v48 }
0x1af8   :  { %4477 = vmatprep.subr.bf16.mxu1 %v4476_v15 }
0x1afb   :  { %4479 = vmatpush3.bf16.msra.mxu1 %v4476_v15 }
0x1bc1   :  { %v4358_v24 = vpop.f32.mrb[32].mxu1 }
0x1bc2   :  { %v3519_v25 = vadd.f32 %v4358_v24, %v1985_v17  ;;  %v3513_v26 = vpop.f32.mrb[33].mxu1 }
0x1bc3   :  { %v3514_v27 = vadd.f32 %v3513_v26, %v1984_v21  ;;  %v1991_v26 = vld [vmem:[#allocation7 + $0xd8] sm:$0xff] }
0x1bc4   :  { %v5247_v28 = vadd.f32 %v3519_v25, %v5068_v43  ;;  %v3945_v43 = vld [vmem:[%s5329_s4 + $0x28] sm:$0xff] }
0x1bc5   :  { %v3522_v29 = vadd.f32 %v3514_v27, %v5066_v42  ;;  %v3944_v42 = vld [vmem:[%s5329_s4 + $0x20] sm:$0xff] }
0x1bc6   :  { %v3527_v23 = vsel %vm197_vm1, %v5247_v28, 0.0  ;;  %v3533_v19 = vmul.f32 %v5247_v28, %v5247_v28  ;;  %v4456_v34 = vpack.c.bf16 %v3945_v43, %v3944_v42  ;;  %v1990_v27 = vld [vmem:[#allocation7 + $0xd0] sm:$0xff] }
0x1bc7   :  { %3528 = vadd.xlane.f32.xlu1 %v3527_v23  ;;  %v3524_v30 = vsel %vm197_vm1, %v3522_v29, 0.0  ;;  %v3532_v31 = vmul.f32 %v3522_v29, %v3522_v29 }
0x1bc8   :  { %3525 = vadd.xlane.f32.xlu0 %v3524_v30  ;;  %v3537_v33 = vsel %vm197_vm1, %v3533_v19, 0.0  ;;  %4457 = vmatprep.subr.bf16.mxu0 %v4456_v34 }
0x1bc9   :  { %v3534_v32 = vsel %vm197_vm1, %v3532_v31, 0.0  ;;  %4459 = vmatpush3.bf16.msra.mxu0 %v4456_v34 }
0x1bca   :  { %4461 = vmatprep.subr.bf16.mxu0 %v4460_v37 }
0x1bcc   :  { %3535 = vadd.xlane.f32.xlu0 %v3534_v32 }
0x1bcd   :  { %4463 = vmatpush3.bf16.msra.mxu0 %v4460_v37 }
0x1bd0   :  { %3538 = vadd.xlane.f32.xlu0 %v3537_v33 }
0x1c54   :  { %v3529_v52 = vpop.xlane.xlu1 %3528 }
0x1c55   :  { %v3526_v50 = vpop.xlane.xlu0 %3525  ;;  %v3531_v53 = vmul.f32 0.03125, %v3529_v52 }
0x1c56   :  { %v3530_v51 = vmul.f32 0.03125, %v3526_v50 }
0x1c57   :  { %v3543_v59 = vmul.f32 %v3531_v53, %v3531_v53  ;;  %v3547_v3 = vsub.f32 %v5247_v28, %v3531_v53 }
0x1c58   :  { %v3542_v56 = vmul.f32 %v3530_v51, %v3530_v51  ;;  %v3546_v58 = vsub.f32 %v3522_v29, %v3530_v51 }
0x1c59   :  { %v3536_v49 = vpop.xlane.xlu0 %3535 }
0x1c5a   :  { %v3540_v54 = vmul.f32 0.03125, %v3536_v49 }
0x1c5c   :  { %v3544_v55 = vsub.f32 %v3540_v54, %v3542_v56  ;;  %v2000_v54 = vld [vmem:[#allocation7 + $0x108] sm:$0xff] }
0x1c5d   :  { %v3539_v57 = vpop.xlane.xlu0 %3538 }
0x1c5e   :  { %v3548_v60 = vadd.f32 1e-05, %v3544_v55  ;;  %v3541_v61 = vmul.f32 0.03125, %v3539_v57 }
0x1c60   :  { %4577 = vrsqrt.f32 %v3548_v60  ;;  %v3545_v62 = vsub.f32 %v3541_v61, %v3543_v59  ;;  %v1999_v59 = vld [vmem:[#allocation7 + $0x100] sm:$0xff]  ;;  %v2003_v60 = vld [vmem:[#allocation7 + $0x118] sm:$0xff] }
0x1c62   :  { %v3549_v47 = vadd.f32 1e-05, %v3545_v62 }
0x1c64   :  { %4579 = vrsqrt.f32 %v3549_v47  ;;  %v2002_v47 = vld [vmem:[#allocation7 + $0x110] sm:$0xff] }
0x1c6a   :  { %v4578_v63 = vpop.eup %4577 }
0x1c6b   :  { %v3552_v1 = vmul.f32 %v4578_v63, %v3546_v58 }
0x1c6d   :  { %v3554_v11 = vmul.f32 %v3552_v1, %v1993_v0 }
0x1c6e   :  { %v4580_v12 = vpop.eup %4579 }
0x1c6f   :  { %v3553_v5 = vmul.f32 %v4580_v12, %v3547_v3  ;;  %v3556_v6 = vadd.f32 %v3554_v11, %v1996_v2 }
0x1c71   :  { %4367 = vmatprep.mubr.msk.f32.mxu0 %vm197_vm1, %v3556_v6  ;;  %v3555_v8 = vmul.f32 %v3553_v5, %v1994_v4  ;;  %v3799_v5 = vld [vmem:[#allocation5 + $0x10] sm:$0xff] }
0x1c73   :  { %v3557_v9 = vadd.f32 %v3555_v8, %v1997_v7 }
0x1c75   :  { %4368 = vmatmul.mubr.msk.f32.vlgmr.msra.gmra.mrb[44].mxu0 %vm197_vm1, %v3557_v9 }
0x1c76   :  { %4393 = vmatprep.mubr.msk.f32.mxu0 %vm72_vm0, %v3799_v5 }
0x1d48   :  { %v4369_v20 = vpop.f32.mrb[44].mxu0 }
0x1d49   :  { %v3636_v22 = vadd.f32 %v4369_v20, %v1988_v16  ;;  %v3630_v17 = vpop.f32.mrb[45].mxu0 }
0x1d4a   :  { %v3631_v21 = vadd.f32 %v3630_v17, %v1987_v18 }
0x1d4b   :  { %v3640_v25 = vmax.f32 %v3636_v22, 0.0 }
0x1d4c   :  { %v3639_v24 = vmax.f32 %v3631_v21, 0.0 }
0x1d4e   :  { %4386 = vmatprep.mubr.msk.f32.mxu1 %vm1838_vm5, %v3639_v24 }
0x1d4f   :  { %4387 = vmatmul.mubr.msk.f32.vlgmr.msra.gmra.mrb[34].mxu1 %vm1838_vm5, %v3640_v25 }
0x1e22   :  { %v4388_v28 = vpop.f32.mrb[34].mxu1 }
0x1e23   :  { %v3719_v29 = vadd.f32 %v4388_v28, %v1991_v26  ;;  %v3713_v23 = vpop.f32.mrb[35].mxu1  ;;  %v3760_v28 = vld [vmem:[#allocation7 + $0x88] sm:$0xff] }
0x1e24   :  { %v3714_v30 = vadd.f32 %v3713_v23, %v1990_v27  ;;  %v3759_v23 = vld [vmem:[#allocation7 + $0x80] sm:$0xff] }
0x1e25   :  { %v3723_v31 = vadd.f32 %v3719_v29, %v3557_v9 }
0x1e26   :  { %v3722_v32 = vadd.f32 %v3714_v30, %v3556_v6 }
0x1e27   :  { %v3727_v19 = vsel %vm197_vm1, %v3723_v31, 0.0  ;;  %v3733_v33 = vmul.f32 %v3723_v31, %v3723_v31 }
0x1e28   :  { %3728 = vadd.xlane.f32.xlu0 %v3727_v19  ;;  %v3724_v42 = vsel %vm197_vm1, %v3722_v32, 0.0  ;;  %v3732_v43 = vmul.f32 %v3722_v32, %v3722_v32  ;;  %v3762_v19 = vld [vmem:[#allocation7 + $0x90] sm:$0xff] }
0x1e29   :  { %3725 = vadd.xlane.f32.xlu1 %v3724_v42  ;;  %v3737_v34 = vsel %vm197_vm1, %v3733_v33, 0.0 }
0x1e2a   :  { %v3734_v35 = vsel %vm197_vm1, %v3732_v43, 0.0 }
0x1e2c   :  { %3738 = vadd.xlane.f32.xlu0 %v3737_v34 }
0x1e2d   :  { %3735 = vadd.xlane.f32.xlu1 %v3734_v35 }
0x1eb5   :  { %v3729_v36 = vpop.xlane.xlu0 %3728 }
0x1eb6   :  { %v3731_v37 = vmul.f32 0.03125, %v3729_v36  ;;  %v3726_v38 = vpop.xlane.xlu1 %3725  ;;  %v3800_v36 = vld [vmem:[#allocation5 + $0x18] sm:$0xff] }
0x1eb7   :  { %v3730_v39 = vmul.f32 0.03125, %v3726_v38 }
0x1eb8   :  { %v3743_v41 = vmul.f32 %v3731_v37, %v3731_v37  ;;  %v3747_v49 = vsub.f32 %v3723_v31, %v3731_v37  ;;  %v3763_v31 = vld [vmem:[#allocation7 + $0x98] sm:$0xff] }
0x1eb9   :  { %v3739_v40 = vpop.xlane.xlu0 %3738  ;;  %v3742_v45 = vmul.f32 %v3730_v39, %v3730_v39  ;;  %v3746_v56 = vsub.f32 %v3722_v32, %v3730_v39 }
0x1eba   :  { %v3741_v13 = vmul.f32 0.03125, %v3739_v40  ;;  %v3736_v44 = vpop.xlane.xlu1 %3735 }
0x1ebb   :  { %v3740_v46 = vmul.f32 0.03125, %v3736_v44 }
0x1ebc   :  { %v3745_v48 = vsub.f32 %v3741_v13, %v3743_v41 }
0x1ebd   :  { %v3744_v50 = vsub.f32 %v3740_v46, %v3742_v45 }
0x1ebe   :  { %v3749_v51 = vadd.f32 1e-05, %v3745_v48 }
0x1ebf   :  { %v3748_v52 = vadd.f32 1e-05, %v3744_v50 }
0x1ec0   :  { %4581 = vrsqrt.f32 %v3749_v51 }
0x1ec1   :  { %4583 = vrsqrt.f32 %v3748_v52 }
0x1eca   :  { %v4582_v53 = vpop.eup %4581 }
0x1ecb   :  { %v4584_v55 = vpop.eup %4583  ;;  %v3753_v57 = vmul.f32 %v4582_v53, %v3747_v49 }
0x1ecc   :  { %v3752_v61 = vmul.f32 %v4584_v55, %v3746_v56 }
0x1ecd   :  { %v3755_v62 = vmul.f32 %v3753_v57, %v2000_v54 }
0x1ece   :  { %v3754_v58 = vmul.f32 %v3752_v61, %v1999_v59 }
0x1ecf   :  { %v3757_v63 = vadd.f32 %v3755_v62, %v2003_v60 }
0x1ed0   :  { %v3756_v0 = vadd.f32 %v3754_v58, %v2002_v47 }
0x1ed1   :  { %v3767_v1 = vsel %vm197_vm1, %v3757_v63, 0.0  ;;  %v3773_v2 = vmul.f32 %v3757_v63, %v3757_v63 }
0x1ed2   :  { %3768 = vadd.xlane.f32.xlu0 %v3767_v1  ;;  %v3764_v3 = vsel %vm197_vm1, %v3756_v0, 0.0  ;;  %v3772_v11 = vmul.f32 %v3756_v0, %v3756_v0 }
0x1ed3   :  { %3765 = vadd.xlane.f32.xlu1 %v3764_v3  ;;  %v3777_v12 = vsel %vm197_vm1, %v3773_v2, 0.0 }
0x1ed4   :  { %v3774_v4 = vsel %vm197_vm1, %v3772_v11, 0.0 }
0x1ed6   :  { %3778 = vadd.xlane.f32.xlu0 %v3777_v12 }
0x1ed7   :  { %3775 = vadd.xlane.f32.xlu1 %v3774_v4 }
0x1f5f   :  { %v3769_v6 = vpop.xlane.xlu0 %3768 }
0x1f60   :  { %v3771_v7 = vmul.f32 0.03125, %v3769_v6  ;;  %v3766_v8 = vpop.xlane.xlu1 %3765 }
0x1f61   :  { %v3770_v9 = vmul.f32 0.03125, %v3766_v8 }
0x1f62   :  { %v3783_v14 = vmul.f32 %v3771_v7, %v3771_v7  ;;  %v3787_v25 = vsub.f32 %v3757_v63, %v3771_v7 }
0x1f63   :  { %v3779_v10 = vpop.xlane.xlu0 %3778  ;;  %v3782_v18 = vmul.f32 %v3770_v9, %v3770_v9  ;;  %v3786_v27 = vsub.f32 %v3756_v0, %v3770_v9 }
0x1f64   :  { %v3781_v15 = vmul.f32 0.03125, %v3779_v10  ;;  %v3776_v16 = vpop.xlane.xlu1 %3775 }
0x1f65   :  { %v3780_v20 = vmul.f32 0.03125, %v3776_v16 }
0x1f66   :  { %v3785_v22 = vsub.f32 %v3781_v15, %v3783_v14 }
0x1f67   :  { %v3784_v17 = vsub.f32 %v3780_v20, %v3782_v18 }
0x1f68   :  { %v3789_v21 = vadd.f32 1e-05, %v3785_v22 }
0x1f69   :  { %v3788_v24 = vadd.f32 1e-05, %v3784_v17 }
0x1f6a   :  { %4585 = vrsqrt.f32 %v3789_v21 }
0x1f6b   :  { %4587 = vrsqrt.f32 %v3788_v24 }
0x1f74   :  { %v4586_v26 = vpop.eup %4585 }
0x1f75   :  { %v4588_v29 = vpop.eup %4587  ;;  %v3793_v30 = vmul.f32 %v4586_v26, %v3787_v25 }
0x1f76   :  { %v3792_v32 = vmul.f32 %v4588_v29, %v3786_v27 }
0x1f77   :  { %v3795_v33 = vmul.f32 %v3793_v30, %v3760_v28 }
0x1f78   :  { %v3794_v42 = vmul.f32 %v3792_v32, %v3759_v23 }
0x1f79   :  { %v3797_v43 = vadd.f32 %v3795_v33, %v3763_v31 }
0x1f7a   :  { %v3796_v34 = vadd.f32 %v3794_v42, %v3762_v19 }
0x1f7c   :  { %v4480_v35 = vpack.c.bf16 %v3797_v43, %v3796_v34 }
0x1f7e   :  { %4481 = vmatprep.subr.bf16.mxu0 %v4480_v35 }
0x1f7f   :  { %4483 = vmatpush3.bf16.msra.mxu0 %v4480_v35 }
0x1f82   :  { %4394 = vmatmul.mubr.msk.f32.vlgmr.msra.gmra.mrb[46].mxu0 %vm72_vm0, %v3800_v36 }
0x2055   :  { %v4395_v37 = vpop.f32.mrb[46].mxu0 }
0x2056   :  { %3883 = vst.msk [vmem:[#allocation8 + $0x8] sm:$0xff] %vm197_vm1, %v4395_v37  ;;  %v3873_v38 = vpop.f32.mrb[47].mxu0 }
0x2057   :  { %3882 = vst.msk [vmem:[#allocation8] sm:$0xff] %vm197_vm1, %v3873_v38 }
0x2058   :  { %4666 = shalt.err (!%p4663_p0)
}
0x2059   :  { %s4667_s30 = scalar_lea.hbm %s5332_s7, 256 }
0x205a   :  { %p4668_p1 = scmp.ne.s32.totalorder %s5332_s7, %s4667_s30  ;;  %p4671_p2 = scmp.lt.u32.totalorder %s4667_s30, %s5332_s7 }
0x205c   :  { %p4673_p3 = pnand %p4671_p2, %p4668_p1 }
0x205e   :  { %4676 = shalt.err (!%p4673_p3)
}
0x205f   :  { %3895 = dma.vmem_to_hbm [thread:$0]  %s3890_s26, 256, %s5332_s7, [#allocation4], %s4685_s13, %s4685_s13, %s4686_s14  }
0x2060   :  { %4681 = dma.done.wait [#allocation4], 256  }
0x2061   :  { %4682 = vsyncadd [#allocation4], 4294967040 }
0x2062   :  { %3899 = vsyncpa [#allocation3], 1 }
0x2063   :  { %3900 = vsyncpa [#allocation6], 1 }
0x2064   :  { %3901 = vsyncpa [#allocation4], 1 }

</bundles_post_ra>
